<compile_context>
chip_gen: v7x
topology: tpu7x:2x2x1
jax: 0.10.0
libtpu: 0.0.40
codegen_flags: <defaults>
</compile_context>

<pallas_src>
import jax
import jax.numpy as jnp
from jax.experimental import pallas as pl
from jax.experimental.pallas import tpu as pltpu

# ---- synthetic model dims (small, consistent with a TTS front-end) ----------
VOCAB = 32   # source dictionary size
H = 32       # encoder hidden size
M = 16       # mel channels
K = 5        # postnet conv kernel width ('same' padding = K // 2)
HOP = 8      # waveform samples emitted per mel frame


# ------------------------- fused speech-generation kernel --------------------
def _speech_kernel(x_ref, len_ref, wih_ref, whh_ref, bl_ref,
                   wmel_ref, bmel_ref, wconv_ref, bconv_ref,
                   wvoc_ref, bvoc_ref, o_ref):
    TB = x_ref.shape[0]
    B = len_ref.shape[0]
    T = TB // B
    f32 = jnp.float32
    bf16 = jnp.bfloat16

    def mm(a, b):
        # bf16 operands (MXU-native on v6e/v7x), f32 accumulation everywhere.
        return jnp.dot(a.astype(bf16), b.astype(bf16),
                       preferred_element_type=f32)

    x = x_ref[...]                       # [T*B, H] f32, time-major rows
    lengths = len_ref[...]               # [B, 1]  int32

    # ---- LSTM input projection, hoisted out of the recurrence --------------
    # four lane-aligned per-gate slabs (i, f, g, o), bias folded in once.
    gx = [mm(x, wih_ref[g]) + bl_ref[g] for g in range(4)]   # 4 x [T*B, H]

    # ---- time recurrence (T known at trace time => fully unrolled, all
    #      slices static; only h @ W_hh_g per gate remains sequential) -------
    h = jnp.zeros((B, H), f32)
    c = jnp.zeros((B, H), f32)
    hs = []
    for t in range(T):
        lo, hi = t * B, (t + 1) * B
        i_g = jax.nn.sigmoid(gx[0][lo:hi] + mm(h, whh_ref[0]))
        f_g = jax.nn.sigmoid(gx[1][lo:hi] + mm(h, whh_ref[1]))
        g_g = jnp.tanh(      gx[2][lo:hi] + mm(h, whh_ref[2]))
        o_g = jax.nn.sigmoid(gx[3][lo:hi] + mm(h, whh_ref[3]))
        c_new = f_g * c + i_g * g_g
        h_new = o_g * jnp.tanh(c_new)
        valid = lengths > t                         # [B, 1] length mask
        c = jnp.where(valid, c_new, c)              # freeze state on padding
        h = jnp.where(valid, h_new, h)
        hs.append(jnp.where(valid, h_new, 0.0))     # zero padded frames
    h_all = jnp.concatenate(hs, axis=0)             # [T*B, H]

    # ---- mel projection -----------------------------------------------------
    mel = mm(h_all, wmel_ref[...]) + bmel_ref[...]            # [T*B, M]

    # ---- conv1d postnet ('same' over T): K shifted full-slab matmuls -------
    pad = K // 2
    zpad = jnp.zeros((pad * B, M), f32)
    mel_pad = jnp.concatenate([zpad, mel, zpad], axis=0)      # [(T+2p)*B, M]
    acc = jnp.zeros((TB, M), f32)
    for k in range(K):                                        # static taps
        acc = acc + mm(mel_pad[k * B:k * B + TB], wconv_ref[k])
    mel_post = mel + jnp.tanh(acc + bconv_ref[...])           # residual

    # ---- vocoder projection -------------------------------------------------
    frames = mm(mel_post, wvoc_ref[...]) + bvoc_ref[...]      # [T*B, HOP]
    o_ref[...] = frames.astype(o_ref.dtype)


def _full_spec(shape):
    return pl.BlockSpec(shape, lambda i: (0,) * len(shape))


def fused_speech_generate(x2d, lengths, p):
    """x2d: [T*B, H] time-major embedded tokens, lengths: [B, 1] int32."""
    TB = x2d.shape[0]
    ins = (x2d, lengths, p["w_ih"], p["w_hh"], p["b_lstm"],
           p["w_mel"], p["b_mel"], p["w_conv"], p["b_conv"],
           p["w_voc"], p["b_voc"])
    return pl.pallas_call(
        _speech_kernel,
        out_shape=jax.ShapeDtypeStruct((TB, HOP), jnp.float32),
        grid=(1,),
        in_specs=[_full_spec(a.shape) for a in ins],
        out_specs=_full_spec((TB, HOP)),
        compiler_params=pltpu.CompilerParams(
            dimension_semantics=("arbitrary",)),
    )(*ins)


# ------------------------- deterministic parameter init ----------------------
def init_params(key):
    ks = jax.random.split(key, 6)
    s = 0.1
    return {
        "embed":  s * jax.random.normal(ks[0], (VOCAB, H), jnp.float32),
        "w_ih":   s * jax.random.normal(ks[1], (4, H, H), jnp.float32),  # per-gate
        "w_hh":   s * jax.random.normal(ks[2], (4, H, H), jnp.float32),  # per-gate
        "b_lstm": jnp.zeros((4, 1, H), jnp.float32),
        "w_mel":  s * jax.random.normal(ks[3], (H, M), jnp.float32),
        "b_mel":  jnp.zeros((1, M), jnp.float32),
        "w_conv": s * jax.random.normal(ks[4], (K, M, M), jnp.float32),
        "b_conv": jnp.zeros((1, M), jnp.float32),
        "w_voc":  s * jax.random.normal(ks[5], (M, HOP), jnp.float32),
        "b_voc":  jnp.zeros((1, HOP), jnp.float32),
    }


# ------------------------- end-to-end jitted pipeline -------------------------
def _generate(params, src_tokens, src_lengths):
    B, T = src_tokens.shape
    # TODO(synk): the embedding gather could be folded into the kernel via
    # PrefetchScalarGridSpec + pl.Element row-gather; at T=8 the XLA gather is
    # negligible so it stays here.
    emb = jnp.take(params["embed"], src_tokens, axis=0)         # [B, T, H]
    x2d = jnp.transpose(emb, (1, 0, 2)).reshape(T * B, H)       # time-major rows
    lengths = src_lengths.reshape(B, 1).astype(jnp.int32)
    frames = fused_speech_generate(x2d, lengths, params)        # [T*B, HOP]
    waveform = frames.reshape(T, B, HOP).transpose(1, 0, 2).reshape(B, T * HOP)
    return waveform


_generate_jit = jax.jit(_generate)


# ------------------------- SpeechGeneration wrapper --------------------------
class SpeechGeneration:
    """JAX/Pallas analog of the fairseq SpeechGeneration benchmarking module.

    forward(sample) takes
        {'net_input': {'src_tokens': [B, T] int32,
                       'src_lengths': [B] int32,
                       'prev_output_tokens': None}}
    sets sample['speaker'] = None (as the PyTorch module does) and returns a
    list of hypotheses, one per batch element, each a dict with a 'waveform'
    entry — mirroring generator.generate(model, sample).
    """
    # TODO(synk): checkpoint loading, pre/BPE tokenizers, and fairseq's
    # autoregressive/beam TTS generator have no Pallas equivalent; a synthetic
    # embed -> LSTM -> mel -> conv-postnet -> waveform stack stands in for the
    # loaded ensemble.

    def __init__(self, params):
        self.params = params
        self.s2x_task = None

    def forward(self, sample):
        sample["speaker"] = None
        net_input = sample["net_input"]
        src_tokens = net_input["src_tokens"]      # [B, T] int32
        src_lengths = net_input["src_lengths"]    # [B] int32

        waveform = _generate_jit(self.params, src_tokens, src_lengths)
        lengths_host = jax.device_get(src_lengths)   # single host sync

        out = []
        for b in range(waveform.shape[0]):
            n = int(lengths_host[b]) * HOP
            out.append({"waveform": waveform[b, :n]})
        return out

    __call__ = forward


if __name__ == "__main__":
    key = jax.random.PRNGKey(0)
    pkey, tkey = jax.random.split(key)
    params = init_params(pkey)

    B, T = 2, 8
    src_tokens = jax.random.randint(tkey, (B, T), 0, VOCAB, dtype=jnp.int32)
    src_lengths = jnp.array([T, T - 2], dtype=jnp.int32)
    sample = {
        "net_input": {
            "src_tokens": src_tokens,
            "src_lengths": src_lengths,
            "prev_output_tokens": None,
        }
    }

    model = SpeechGeneration(params)
    output = model.forward(sample)

    for hypo in output:
        jax.block_until_ready(hypo["waveform"])
    assert output[0]["waveform"].shape == (T * HOP,)
    assert output[1]["waveform"].shape == ((T - 2) * HOP,)
    print("KERNEL_OK")
</pallas_src>

<mosaic_0001>
module attributes {stable_mosaic.version = 11 : i64} {
  func.func @_speech_kernel(%arg0: i32, %arg1: memref<16x32xf32, #tpu.memory_space<vmem>>, %arg2: memref<2x1xi32, #tpu.memory_space<vmem>>, %arg3: memref<4x32x32xf32, #tpu.memory_space<vmem>>, %arg4: memref<4x32x32xf32, #tpu.memory_space<vmem>>, %arg5: memref<4x1x32xf32, #tpu.memory_space<vmem>>, %arg6: memref<32x16xf32, #tpu.memory_space<vmem>>, %arg7: memref<1x16xf32, #tpu.memory_space<vmem>>, %arg8: memref<5x16x16xf32, #tpu.memory_space<vmem>>, %arg9: memref<1x16xf32, #tpu.memory_space<vmem>>, %arg10: memref<16x8xf32, #tpu.memory_space<vmem>>, %arg11: memref<1x8xf32, #tpu.memory_space<vmem>>, %arg12: memref<16x8xf32, #tpu.memory_space<vmem>>) attributes {dimension_semantics = [#tpu.dimension_semantics<arbitrary>], iteration_bounds = array<i64: 1>, scalar_prefetch = 0 : i64, scratch_operands = 0 : i64, tpu.core_type = #tpu.core_type<tc>, window_params = [{pipeline_mode = #tpu.pipeline_mode<synchronous>, transform_indices = @transform_0, window_bounds = array<i64: 16, 32>}, {pipeline_mode = #tpu.pipeline_mode<synchronous>, transform_indices = @transform_1, window_bounds = array<i64: 2, 1>}, {pipeline_mode = #tpu.pipeline_mode<synchronous>, transform_indices = @transform_2, window_bounds = array<i64: 4, 32, 32>}, {pipeline_mode = #tpu.pipeline_mode<synchronous>, transform_indices = @transform_3, window_bounds = array<i64: 4, 32, 32>}, {pipeline_mode = #tpu.pipeline_mode<synchronous>, transform_indices = @transform_4, window_bounds = array<i64: 4, 1, 32>}, {pipeline_mode = #tpu.pipeline_mode<synchronous>, transform_indices = @transform_5, window_bounds = array<i64: 32, 16>}, {pipeline_mode = #tpu.pipeline_mode<synchronous>, transform_indices = @transform_6, window_bounds = array<i64: 1, 16>}, {pipeline_mode = #tpu.pipeline_mode<synchronous>, transform_indices = @transform_7, window_bounds = array<i64: 5, 16, 16>}, {pipeline_mode = #tpu.pipeline_mode<synchronous>, transform_indices = @transform_8, window_bounds = array<i64: 1, 16>}, {pipeline_mode = #tpu.pipeline_mode<synchronous>, transform_indices = @transform_9, window_bounds = array<i64: 16, 8>}, {pipeline_mode = #tpu.pipeline_mode<synchronous>, transform_indices = @transform_10, window_bounds = array<i64: 1, 8>}, {pipeline_mode = #tpu.pipeline_mode<synchronous>, transform_indices = @transform_11, window_bounds = array<i64: 16, 8>}]} {
    %c0 = arith.constant 0 : index
    %c0_0 = arith.constant 0 : index
    %0 = vector.load %arg1[%c0, %c0_0] : memref<16x32xf32, #tpu.memory_space<vmem>>, vector<16x32xf32>
    %c0_1 = arith.constant 0 : index
    %c0_2 = arith.constant 0 : index
    %1 = vector.load %arg2[%c0_1, %c0_2] : memref<2x1xi32, #tpu.memory_space<vmem>>, vector<2x1xi32>
    %c0_3 = arith.constant 0 : index
    %c0_4 = arith.constant 0 : index
    %c0_5 = arith.constant 0 : index
    %2 = vector.load %arg3[%c0_3, %c0_4, %c0_5] : memref<4x32x32xf32, #tpu.memory_space<vmem>>, vector<1x32x32xf32>
    %3 = vector.shape_cast %2 : vector<1x32x32xf32> to vector<32x32xf32>
    %4 = arith.truncf %0 : vector<16x32xf32> to vector<16x32xbf16>
    %5 = arith.truncf %3 : vector<32x32xf32> to vector<32x32xbf16>
    %cst = arith.constant dense<0.000000e+00> : vector<16x32xf32>
    %6 = tpu.matmul %4, %5, %cst {dimension_numbers = #tpu.dot_dimension_numbers<[1], [0], [0], [1], [0, 0, 1, 1], [], []>} : vector<16x32xbf16>, vector<32x32xbf16>, vector<16x32xf32> -> vector<16x32xf32>
    %c0_6 = arith.constant 0 : index
    %c0_7 = arith.constant 0 : index
    %c0_8 = arith.constant 0 : index
    %7 = vector.load %arg5[%c0_6, %c0_7, %c0_8] : memref<4x1x32xf32, #tpu.memory_space<vmem>>, vector<1x1x32xf32>
    %8 = vector.shape_cast %7 : vector<1x1x32xf32> to vector<1x32xf32>
    %9 = vector.broadcast %8 : vector<1x32xf32> to vector<16x32xf32>
    %10 = arith.addf %6, %9 : vector<16x32xf32>
    %c1 = arith.constant 1 : index
    %c0_9 = arith.constant 0 : index
    %c0_10 = arith.constant 0 : index
    %11 = vector.load %arg3[%c1, %c0_9, %c0_10] : memref<4x32x32xf32, #tpu.memory_space<vmem>>, vector<1x32x32xf32>
    %12 = vector.shape_cast %11 : vector<1x32x32xf32> to vector<32x32xf32>
    %13 = arith.truncf %0 : vector<16x32xf32> to vector<16x32xbf16>
    %14 = arith.truncf %12 : vector<32x32xf32> to vector<32x32xbf16>
    %cst_11 = arith.constant dense<0.000000e+00> : vector<16x32xf32>
    %15 = tpu.matmul %13, %14, %cst_11 {dimension_numbers = #tpu.dot_dimension_numbers<[1], [0], [0], [1], [0, 0, 1, 1], [], []>} : vector<16x32xbf16>, vector<32x32xbf16>, vector<16x32xf32> -> vector<16x32xf32>
    %c1_12 = arith.constant 1 : index
    %c0_13 = arith.constant 0 : index
    %c0_14 = arith.constant 0 : index
    %16 = vector.load %arg5[%c1_12, %c0_13, %c0_14] : memref<4x1x32xf32, #tpu.memory_space<vmem>>, vector<1x1x32xf32>
    %17 = vector.shape_cast %16 : vector<1x1x32xf32> to vector<1x32xf32>
    %18 = vector.broadcast %17 : vector<1x32xf32> to vector<16x32xf32>
    %19 = arith.addf %15, %18 : vector<16x32xf32>
    %c2 = arith.constant 2 : index
    %c0_15 = arith.constant 0 : index
    %c0_16 = arith.constant 0 : index
    %20 = vector.load %arg3[%c2, %c0_15, %c0_16] : memref<4x32x32xf32, #tpu.memory_space<vmem>>, vector<1x32x32xf32>
    %21 = vector.shape_cast %20 : vector<1x32x32xf32> to vector<32x32xf32>
    %22 = arith.truncf %0 : vector<16x32xf32> to vector<16x32xbf16>
    %23 = arith.truncf %21 : vector<32x32xf32> to vector<32x32xbf16>
    %cst_17 = arith.constant dense<0.000000e+00> : vector<16x32xf32>
    %24 = tpu.matmul %22, %23, %cst_17 {dimension_numbers = #tpu.dot_dimension_numbers<[1], [0], [0], [1], [0, 0, 1, 1], [], []>} : vector<16x32xbf16>, vector<32x32xbf16>, vector<16x32xf32> -> vector<16x32xf32>
    %c2_18 = arith.constant 2 : index
    %c0_19 = arith.constant 0 : index
    %c0_20 = arith.constant 0 : index
    %25 = vector.load %arg5[%c2_18, %c0_19, %c0_20] : memref<4x1x32xf32, #tpu.memory_space<vmem>>, vector<1x1x32xf32>
    %26 = vector.shape_cast %25 : vector<1x1x32xf32> to vector<1x32xf32>
    %27 = vector.broadcast %26 : vector<1x32xf32> to vector<16x32xf32>
    %28 = arith.addf %24, %27 : vector<16x32xf32>
    %c3 = arith.constant 3 : index
    %c0_21 = arith.constant 0 : index
    %c0_22 = arith.constant 0 : index
    %29 = vector.load %arg3[%c3, %c0_21, %c0_22] : memref<4x32x32xf32, #tpu.memory_space<vmem>>, vector<1x32x32xf32>
    %30 = vector.shape_cast %29 : vector<1x32x32xf32> to vector<32x32xf32>
    %31 = arith.truncf %0 : vector<16x32xf32> to vector<16x32xbf16>
    %32 = arith.truncf %30 : vector<32x32xf32> to vector<32x32xbf16>
    %cst_23 = arith.constant dense<0.000000e+00> : vector<16x32xf32>
    %33 = tpu.matmul %31, %32, %cst_23 {dimension_numbers = #tpu.dot_dimension_numbers<[1], [0], [0], [1], [0, 0, 1, 1], [], []>} : vector<16x32xbf16>, vector<32x32xbf16>, vector<16x32xf32> -> vector<16x32xf32>
    %c3_24 = arith.constant 3 : index
    %c0_25 = arith.constant 0 : index
    %c0_26 = arith.constant 0 : index
    %34 = vector.load %arg5[%c3_24, %c0_25, %c0_26] : memref<4x1x32xf32, #tpu.memory_space<vmem>>, vector<1x1x32xf32>
    %35 = vector.shape_cast %34 : vector<1x1x32xf32> to vector<1x32xf32>
    %36 = vector.broadcast %35 : vector<1x32xf32> to vector<16x32xf32>
    %37 = arith.addf %33, %36 : vector<16x32xf32>
    %cst_27 = arith.constant 0.000000e+00 : f32
    %38 = vector.broadcast %cst_27 : f32 to vector<2x32xf32>
    %cst_28 = arith.constant 0.000000e+00 : f32
    %39 = vector.broadcast %cst_28 : f32 to vector<2x32xf32>
    %40 = vector.extract_strided_slice %10 {offsets = [0, 0], sizes = [2, 32], strides = [1, 1]} : vector<16x32xf32> to vector<2x32xf32>
    %c0_29 = arith.constant 0 : index
    %c0_30 = arith.constant 0 : index
    %c0_31 = arith.constant 0 : index
    %41 = vector.load %arg4[%c0_29, %c0_30, %c0_31] : memref<4x32x32xf32, #tpu.memory_space<vmem>>, vector<1x32x32xf32>
    %42 = vector.shape_cast %41 : vector<1x32x32xf32> to vector<32x32xf32>
    %43 = arith.truncf %38 : vector<2x32xf32> to vector<2x32xbf16>
    %44 = arith.truncf %42 : vector<32x32xf32> to vector<32x32xbf16>
    %cst_32 = arith.constant dense<0.000000e+00> : vector<2x32xf32>
    %45 = tpu.matmul %43, %44, %cst_32 {dimension_numbers = #tpu.dot_dimension_numbers<[1], [0], [0], [1], [0, 0, 1, 1], [], []>} : vector<2x32xbf16>, vector<32x32xbf16>, vector<2x32xf32> -> vector<2x32xf32>
    %46 = arith.addf %40, %45 : vector<2x32xf32>
    %47 = arith.negf %46 : vector<2x32xf32>
    %48 = math.exp %47 : vector<2x32xf32>
    %cst_33 = arith.constant 1.000000e+00 : f32
    %49 = vector.broadcast %cst_33 : f32 to vector<2x32xf32>
    %50 = arith.addf %49, %48 : vector<2x32xf32>
    %51 = arith.divf %49, %50 : vector<2x32xf32>
    %52 = vector.extract_strided_slice %19 {offsets = [0, 0], sizes = [2, 32], strides = [1, 1]} : vector<16x32xf32> to vector<2x32xf32>
    %c1_34 = arith.constant 1 : index
    %c0_35 = arith.constant 0 : index
    %c0_36 = arith.constant 0 : index
    %53 = vector.load %arg4[%c1_34, %c0_35, %c0_36] : memref<4x32x32xf32, #tpu.memory_space<vmem>>, vector<1x32x32xf32>
    %54 = vector.shape_cast %53 : vector<1x32x32xf32> to vector<32x32xf32>
    %55 = arith.truncf %38 : vector<2x32xf32> to vector<2x32xbf16>
    %56 = arith.truncf %54 : vector<32x32xf32> to vector<32x32xbf16>
    %cst_37 = arith.constant dense<0.000000e+00> : vector<2x32xf32>
    %57 = tpu.matmul %55, %56, %cst_37 {dimension_numbers = #tpu.dot_dimension_numbers<[1], [0], [0], [1], [0, 0, 1, 1], [], []>} : vector<2x32xbf16>, vector<32x32xbf16>, vector<2x32xf32> -> vector<2x32xf32>
    %58 = arith.addf %52, %57 : vector<2x32xf32>
    %59 = arith.negf %58 : vector<2x32xf32>
    %60 = math.exp %59 : vector<2x32xf32>
    %cst_38 = arith.constant 1.000000e+00 : f32
    %61 = vector.broadcast %cst_38 : f32 to vector<2x32xf32>
    %62 = arith.addf %61, %60 : vector<2x32xf32>
    %63 = arith.divf %61, %62 : vector<2x32xf32>
    %64 = vector.extract_strided_slice %28 {offsets = [0, 0], sizes = [2, 32], strides = [1, 1]} : vector<16x32xf32> to vector<2x32xf32>
    %c2_39 = arith.constant 2 : index
    %c0_40 = arith.constant 0 : index
    %c0_41 = arith.constant 0 : index
    %65 = vector.load %arg4[%c2_39, %c0_40, %c0_41] : memref<4x32x32xf32, #tpu.memory_space<vmem>>, vector<1x32x32xf32>
    %66 = vector.shape_cast %65 : vector<1x32x32xf32> to vector<32x32xf32>
    %67 = arith.truncf %38 : vector<2x32xf32> to vector<2x32xbf16>
    %68 = arith.truncf %66 : vector<32x32xf32> to vector<32x32xbf16>
    %cst_42 = arith.constant dense<0.000000e+00> : vector<2x32xf32>
    %69 = tpu.matmul %67, %68, %cst_42 {dimension_numbers = #tpu.dot_dimension_numbers<[1], [0], [0], [1], [0, 0, 1, 1], [], []>} : vector<2x32xbf16>, vector<32x32xbf16>, vector<2x32xf32> -> vector<2x32xf32>
    %70 = arith.addf %64, %69 : vector<2x32xf32>
    %71 = math.tanh %70 : vector<2x32xf32>
    %72 = vector.extract_strided_slice %37 {offsets = [0, 0], sizes = [2, 32], strides = [1, 1]} : vector<16x32xf32> to vector<2x32xf32>
    %c3_43 = arith.constant 3 : index
    %c0_44 = arith.constant 0 : index
    %c0_45 = arith.constant 0 : index
    %73 = vector.load %arg4[%c3_43, %c0_44, %c0_45] : memref<4x32x32xf32, #tpu.memory_space<vmem>>, vector<1x32x32xf32>
    %74 = vector.shape_cast %73 : vector<1x32x32xf32> to vector<32x32xf32>
    %75 = arith.truncf %38 : vector<2x32xf32> to vector<2x32xbf16>
    %76 = arith.truncf %74 : vector<32x32xf32> to vector<32x32xbf16>
    %cst_46 = arith.constant dense<0.000000e+00> : vector<2x32xf32>
    %77 = tpu.matmul %75, %76, %cst_46 {dimension_numbers = #tpu.dot_dimension_numbers<[1], [0], [0], [1], [0, 0, 1, 1], [], []>} : vector<2x32xbf16>, vector<32x32xbf16>, vector<2x32xf32> -> vector<2x32xf32>
    %78 = arith.addf %72, %77 : vector<2x32xf32>
    %79 = arith.negf %78 : vector<2x32xf32>
    %80 = math.exp %79 : vector<2x32xf32>
    %cst_47 = arith.constant 1.000000e+00 : f32
    %81 = vector.broadcast %cst_47 : f32 to vector<2x32xf32>
    %82 = arith.addf %81, %80 : vector<2x32xf32>
    %83 = arith.divf %81, %82 : vector<2x32xf32>
    %84 = arith.mulf %63, %39 : vector<2x32xf32>
    %85 = arith.mulf %51, %71 : vector<2x32xf32>
    %86 = arith.addf %84, %85 : vector<2x32xf32>
    %87 = math.tanh %86 : vector<2x32xf32>
    %88 = arith.mulf %83, %87 : vector<2x32xf32>
    %c0_i32 = arith.constant 0 : i32
    %89 = vector.broadcast %c0_i32 : i32 to vector<2x1xi32>
    %90 = arith.cmpi sgt, %1, %89 : vector<2x1xi32>
    %91 = vector.shape_cast %90 : vector<2x1xi1> to vector<2x1xi1>
    %92 = vector.broadcast %91 : vector<2x1xi1> to vector<2x32xi1>
    %93 = arith.select %92, %86, %39 : vector<2x32xi1>, vector<2x32xf32>
    %94 = vector.shape_cast %90 : vector<2x1xi1> to vector<2x1xi1>
    %95 = vector.broadcast %94 : vector<2x1xi1> to vector<2x32xi1>
    %96 = arith.select %95, %88, %38 : vector<2x32xi1>, vector<2x32xf32>
    %cst_48 = arith.constant 0.000000e+00 : f32
    %97 = vector.shape_cast %90 : vector<2x1xi1> to vector<2x1xi1>
    %98 = vector.broadcast %97 : vector<2x1xi1> to vector<2x32xi1>
    %99 = vector.broadcast %cst_48 : f32 to vector<2x32xf32>
    %100 = arith.select %98, %88, %99 : vector<2x32xi1>, vector<2x32xf32>
    %101 = vector.extract_strided_slice %10 {offsets = [2, 0], sizes = [2, 32], strides = [1, 1]} : vector<16x32xf32> to vector<2x32xf32>
    %c0_49 = arith.constant 0 : index
    %c0_50 = arith.constant 0 : index
    %c0_51 = arith.constant 0 : index
    %102 = vector.load %arg4[%c0_49, %c0_50, %c0_51] : memref<4x32x32xf32, #tpu.memory_space<vmem>>, vector<1x32x32xf32>
    %103 = vector.shape_cast %102 : vector<1x32x32xf32> to vector<32x32xf32>
    %104 = arith.truncf %96 : vector<2x32xf32> to vector<2x32xbf16>
    %105 = arith.truncf %103 : vector<32x32xf32> to vector<32x32xbf16>
    %cst_52 = arith.constant dense<0.000000e+00> : vector<2x32xf32>
    %106 = tpu.matmul %104, %105, %cst_52 {dimension_numbers = #tpu.dot_dimension_numbers<[1], [0], [0], [1], [0, 0, 1, 1], [], []>} : vector<2x32xbf16>, vector<32x32xbf16>, vector<2x32xf32> -> vector<2x32xf32>
    %107 = arith.addf %101, %106 : vector<2x32xf32>
    %108 = arith.negf %107 : vector<2x32xf32>
    %109 = math.exp %108 : vector<2x32xf32>
    %cst_53 = arith.constant 1.000000e+00 : f32
    %110 = vector.broadcast %cst_53 : f32 to vector<2x32xf32>
    %111 = arith.addf %110, %109 : vector<2x32xf32>
    %112 = arith.divf %110, %111 : vector<2x32xf32>
    %113 = vector.extract_strided_slice %19 {offsets = [2, 0], sizes = [2, 32], strides = [1, 1]} : vector<16x32xf32> to vector<2x32xf32>
    %c1_54 = arith.constant 1 : index
    %c0_55 = arith.constant 0 : index
    %c0_56 = arith.constant 0 : index
    %114 = vector.load %arg4[%c1_54, %c0_55, %c0_56] : memref<4x32x32xf32, #tpu.memory_space<vmem>>, vector<1x32x32xf32>
    %115 = vector.shape_cast %114 : vector<1x32x32xf32> to vector<32x32xf32>
    %116 = arith.truncf %96 : vector<2x32xf32> to vector<2x32xbf16>
    %117 = arith.truncf %115 : vector<32x32xf32> to vector<32x32xbf16>
    %cst_57 = arith.constant dense<0.000000e+00> : vector<2x32xf32>
    %118 = tpu.matmul %116, %117, %cst_57 {dimension_numbers = #tpu.dot_dimension_numbers<[1], [0], [0], [1], [0, 0, 1, 1], [], []>} : vector<2x32xbf16>, vector<32x32xbf16>, vector<2x32xf32> -> vector<2x32xf32>
    %119 = arith.addf %113, %118 : vector<2x32xf32>
    %120 = arith.negf %119 : vector<2x32xf32>
    %121 = math.exp %120 : vector<2x32xf32>
    %cst_58 = arith.constant 1.000000e+00 : f32
    %122 = vector.broadcast %cst_58 : f32 to vector<2x32xf32>
    %123 = arith.addf %122, %121 : vector<2x32xf32>
    %124 = arith.divf %122, %123 : vector<2x32xf32>
    %125 = vector.extract_strided_slice %28 {offsets = [2, 0], sizes = [2, 32], strides = [1, 1]} : vector<16x32xf32> to vector<2x32xf32>
    %c2_59 = arith.constant 2 : index
    %c0_60 = arith.constant 0 : index
    %c0_61 = arith.constant 0 : index
    %126 = vector.load %arg4[%c2_59, %c0_60, %c0_61] : memref<4x32x32xf32, #tpu.memory_space<vmem>>, vector<1x32x32xf32>
    %127 = vector.shape_cast %126 : vector<1x32x32xf32> to vector<32x32xf32>
    %128 = arith.truncf %96 : vector<2x32xf32> to vector<2x32xbf16>
    %129 = arith.truncf %127 : vector<32x32xf32> to vector<32x32xbf16>
    %cst_62 = arith.constant dense<0.000000e+00> : vector<2x32xf32>
    %130 = tpu.matmul %128, %129, %cst_62 {dimension_numbers = #tpu.dot_dimension_numbers<[1], [0], [0], [1], [0, 0, 1, 1], [], []>} : vector<2x32xbf16>, vector<32x32xbf16>, vector<2x32xf32> -> vector<2x32xf32>
    %131 = arith.addf %125, %130 : vector<2x32xf32>
    %132 = math.tanh %131 : vector<2x32xf32>
    %133 = vector.extract_strided_slice %37 {offsets = [2, 0], sizes = [2, 32], strides = [1, 1]} : vector<16x32xf32> to vector<2x32xf32>
    %c3_63 = arith.constant 3 : index
    %c0_64 = arith.constant 0 : index
    %c0_65 = arith.constant 0 : index
    %134 = vector.load %arg4[%c3_63, %c0_64, %c0_65] : memref<4x32x32xf32, #tpu.memory_space<vmem>>, vector<1x32x32xf32>
    %135 = vector.shape_cast %134 : vector<1x32x32xf32> to vector<32x32xf32>
    %136 = arith.truncf %96 : vector<2x32xf32> to vector<2x32xbf16>
    %137 = arith.truncf %135 : vector<32x32xf32> to vector<32x32xbf16>
    %cst_66 = arith.constant dense<0.000000e+00> : vector<2x32xf32>
    %138 = tpu.matmul %136, %137, %cst_66 {dimension_numbers = #tpu.dot_dimension_numbers<[1], [0], [0], [1], [0, 0, 1, 1], [], []>} : vector<2x32xbf16>, vector<32x32xbf16>, vector<2x32xf32> -> vector<2x32xf32>
    %139 = arith.addf %133, %138 : vector<2x32xf32>
    %140 = arith.negf %139 : vector<2x32xf32>
    %141 = math.exp %140 : vector<2x32xf32>
    %cst_67 = arith.constant 1.000000e+00 : f32
    %142 = vector.broadcast %cst_67 : f32 to vector<2x32xf32>
    %143 = arith.addf %142, %141 : vector<2x32xf32>
    %144 = arith.divf %142, %143 : vector<2x32xf32>
    %145 = arith.mulf %124, %93 : vector<2x32xf32>
    %146 = arith.mulf %112, %132 : vector<2x32xf32>
    %147 = arith.addf %145, %146 : vector<2x32xf32>
    %148 = math.tanh %147 : vector<2x32xf32>
    %149 = arith.mulf %144, %148 : vector<2x32xf32>
    %c1_i32 = arith.constant 1 : i32
    %150 = vector.broadcast %c1_i32 : i32 to vector<2x1xi32>
    %151 = arith.cmpi sgt, %1, %150 : vector<2x1xi32>
    %152 = vector.shape_cast %151 : vector<2x1xi1> to vector<2x1xi1>
    %153 = vector.broadcast %152 : vector<2x1xi1> to vector<2x32xi1>
    %154 = arith.select %153, %147, %93 : vector<2x32xi1>, vector<2x32xf32>
    %155 = vector.shape_cast %151 : vector<2x1xi1> to vector<2x1xi1>
    %156 = vector.broadcast %155 : vector<2x1xi1> to vector<2x32xi1>
    %157 = arith.select %156, %149, %96 : vector<2x32xi1>, vector<2x32xf32>
    %cst_68 = arith.constant 0.000000e+00 : f32
    %158 = vector.shape_cast %151 : vector<2x1xi1> to vector<2x1xi1>
    %159 = vector.broadcast %158 : vector<2x1xi1> to vector<2x32xi1>
    %160 = vector.broadcast %cst_68 : f32 to vector<2x32xf32>
    %161 = arith.select %159, %149, %160 : vector<2x32xi1>, vector<2x32xf32>
    %162 = vector.extract_strided_slice %10 {offsets = [4, 0], sizes = [2, 32], strides = [1, 1]} : vector<16x32xf32> to vector<2x32xf32>
    %c0_69 = arith.constant 0 : index
    %c0_70 = arith.constant 0 : index
    %c0_71 = arith.constant 0 : index
    %163 = vector.load %arg4[%c0_69, %c0_70, %c0_71] : memref<4x32x32xf32, #tpu.memory_space<vmem>>, vector<1x32x32xf32>
    %164 = vector.shape_cast %163 : vector<1x32x32xf32> to vector<32x32xf32>
    %165 = arith.truncf %157 : vector<2x32xf32> to vector<2x32xbf16>
    %166 = arith.truncf %164 : vector<32x32xf32> to vector<32x32xbf16>
    %cst_72 = arith.constant dense<0.000000e+00> : vector<2x32xf32>
    %167 = tpu.matmul %165, %166, %cst_72 {dimension_numbers = #tpu.dot_dimension_numbers<[1], [0], [0], [1], [0, 0, 1, 1], [], []>} : vector<2x32xbf16>, vector<32x32xbf16>, vector<2x32xf32> -> vector<2x32xf32>
    %168 = arith.addf %162, %167 : vector<2x32xf32>
    %169 = arith.negf %168 : vector<2x32xf32>
    %170 = math.exp %169 : vector<2x32xf32>
    %cst_73 = arith.constant 1.000000e+00 : f32
    %171 = vector.broadcast %cst_73 : f32 to vector<2x32xf32>
    %172 = arith.addf %171, %170 : vector<2x32xf32>
    %173 = arith.divf %171, %172 : vector<2x32xf32>
    %174 = vector.extract_strided_slice %19 {offsets = [4, 0], sizes = [2, 32], strides = [1, 1]} : vector<16x32xf32> to vector<2x32xf32>
    %c1_74 = arith.constant 1 : index
    %c0_75 = arith.constant 0 : index
    %c0_76 = arith.constant 0 : index
    %175 = vector.load %arg4[%c1_74, %c0_75, %c0_76] : memref<4x32x32xf32, #tpu.memory_space<vmem>>, vector<1x32x32xf32>
    %176 = vector.shape_cast %175 : vector<1x32x32xf32> to vector<32x32xf32>
    %177 = arith.truncf %157 : vector<2x32xf32> to vector<2x32xbf16>
    %178 = arith.truncf %176 : vector<32x32xf32> to vector<32x32xbf16>
    %cst_77 = arith.constant dense<0.000000e+00> : vector<2x32xf32>
    %179 = tpu.matmul %177, %178, %cst_77 {dimension_numbers = #tpu.dot_dimension_numbers<[1], [0], [0], [1], [0, 0, 1, 1], [], []>} : vector<2x32xbf16>, vector<32x32xbf16>, vector<2x32xf32> -> vector<2x32xf32>
    %180 = arith.addf %174, %179 : vector<2x32xf32>
    %181 = arith.negf %180 : vector<2x32xf32>
    %182 = math.exp %181 : vector<2x32xf32>
    %cst_78 = arith.constant 1.000000e+00 : f32
    %183 = vector.broadcast %cst_78 : f32 to vector<2x32xf32>
    %184 = arith.addf %183, %182 : vector<2x32xf32>
    %185 = arith.divf %183, %184 : vector<2x32xf32>
    %186 = vector.extract_strided_slice %28 {offsets = [4, 0], sizes = [2, 32], strides = [1, 1]} : vector<16x32xf32> to vector<2x32xf32>
    %c2_79 = arith.constant 2 : index
    %c0_80 = arith.constant 0 : index
    %c0_81 = arith.constant 0 : index
    %187 = vector.load %arg4[%c2_79, %c0_80, %c0_81] : memref<4x32x32xf32, #tpu.memory_space<vmem>>, vector<1x32x32xf32>
    %188 = vector.shape_cast %187 : vector<1x32x32xf32> to vector<32x32xf32>
    %189 = arith.truncf %157 : vector<2x32xf32> to vector<2x32xbf16>
    %190 = arith.truncf %188 : vector<32x32xf32> to vector<32x32xbf16>
    %cst_82 = arith.constant dense<0.000000e+00> : vector<2x32xf32>
    %191 = tpu.matmul %189, %190, %cst_82 {dimension_numbers = #tpu.dot_dimension_numbers<[1], [0], [0], [1], [0, 0, 1, 1], [], []>} : vector<2x32xbf16>, vector<32x32xbf16>, vector<2x32xf32> -> vector<2x32xf32>
    %192 = arith.addf %186, %191 : vector<2x32xf32>
    %193 = math.tanh %192 : vector<2x32xf32>
    %194 = vector.extract_strided_slice %37 {offsets = [4, 0], sizes = [2, 32], strides = [1, 1]} : vector<16x32xf32> to vector<2x32xf32>
    %c3_83 = arith.constant 3 : index
    %c0_84 = arith.constant 0 : index
    %c0_85 = arith.constant 0 : index
    %195 = vector.load %arg4[%c3_83, %c0_84, %c0_85] : memref<4x32x32xf32, #tpu.memory_space<vmem>>, vector<1x32x32xf32>
    %196 = vector.shape_cast %195 : vector<1x32x32xf32> to vector<32x32xf32>
    %197 = arith.truncf %157 : vector<2x32xf32> to vector<2x32xbf16>
    %198 = arith.truncf %196 : vector<32x32xf32> to vector<32x32xbf16>
    %cst_86 = arith.constant dense<0.000000e+00> : vector<2x32xf32>
    %199 = tpu.matmul %197, %198, %cst_86 {dimension_numbers = #tpu.dot_dimension_numbers<[1], [0], [0], [1], [0, 0, 1, 1], [], []>} : vector<2x32xbf16>, vector<32x32xbf16>, vector<2x32xf32> -> vector<2x32xf32>
    %200 = arith.addf %194, %199 : vector<2x32xf32>
    %201 = arith.negf %200 : vector<2x32xf32>
    %202 = math.exp %201 : vector<2x32xf32>
    %cst_87 = arith.constant 1.000000e+00 : f32
    %203 = vector.broadcast %cst_87 : f32 to vector<2x32xf32>
    %204 = arith.addf %203, %202 : vector<2x32xf32>
    %205 = arith.divf %203, %204 : vector<2x32xf32>
    %206 = arith.mulf %185, %154 : vector<2x32xf32>
    %207 = arith.mulf %173, %193 : vector<2x32xf32>
    %208 = arith.addf %206, %207 : vector<2x32xf32>
    %209 = math.tanh %208 : vector<2x32xf32>
    %210 = arith.mulf %205, %209 : vector<2x32xf32>
    %c2_i32 = arith.constant 2 : i32
    %211 = vector.broadcast %c2_i32 : i32 to vector<2x1xi32>
    %212 = arith.cmpi sgt, %1, %211 : vector<2x1xi32>
    %213 = vector.shape_cast %212 : vector<2x1xi1> to vector<2x1xi1>
    %214 = vector.broadcast %213 : vector<2x1xi1> to vector<2x32xi1>
    %215 = arith.select %214, %208, %154 : vector<2x32xi1>, vector<2x32xf32>
    %216 = vector.shape_cast %212 : vector<2x1xi1> to vector<2x1xi1>
    %217 = vector.broadcast %216 : vector<2x1xi1> to vector<2x32xi1>
    %218 = arith.select %217, %210, %157 : vector<2x32xi1>, vector<2x32xf32>
    %cst_88 = arith.constant 0.000000e+00 : f32
    %219 = vector.shape_cast %212 : vector<2x1xi1> to vector<2x1xi1>
    %220 = vector.broadcast %219 : vector<2x1xi1> to vector<2x32xi1>
    %221 = vector.broadcast %cst_88 : f32 to vector<2x32xf32>
    %222 = arith.select %220, %210, %221 : vector<2x32xi1>, vector<2x32xf32>
    %223 = vector.extract_strided_slice %10 {offsets = [6, 0], sizes = [2, 32], strides = [1, 1]} : vector<16x32xf32> to vector<2x32xf32>
    %c0_89 = arith.constant 0 : index
    %c0_90 = arith.constant 0 : index
    %c0_91 = arith.constant 0 : index
    %224 = vector.load %arg4[%c0_89, %c0_90, %c0_91] : memref<4x32x32xf32, #tpu.memory_space<vmem>>, vector<1x32x32xf32>
    %225 = vector.shape_cast %224 : vector<1x32x32xf32> to vector<32x32xf32>
    %226 = arith.truncf %218 : vector<2x32xf32> to vector<2x32xbf16>
    %227 = arith.truncf %225 : vector<32x32xf32> to vector<32x32xbf16>
    %cst_92 = arith.constant dense<0.000000e+00> : vector<2x32xf32>
    %228 = tpu.matmul %226, %227, %cst_92 {dimension_numbers = #tpu.dot_dimension_numbers<[1], [0], [0], [1], [0, 0, 1, 1], [], []>} : vector<2x32xbf16>, vector<32x32xbf16>, vector<2x32xf32> -> vector<2x32xf32>
    %229 = arith.addf %223, %228 : vector<2x32xf32>
    %230 = arith.negf %229 : vector<2x32xf32>
    %231 = math.exp %230 : vector<2x32xf32>
    %cst_93 = arith.constant 1.000000e+00 : f32
    %232 = vector.broadcast %cst_93 : f32 to vector<2x32xf32>
    %233 = arith.addf %232, %231 : vector<2x32xf32>
    %234 = arith.divf %232, %233 : vector<2x32xf32>
    %235 = vector.extract_strided_slice %19 {offsets = [6, 0], sizes = [2, 32], strides = [1, 1]} : vector<16x32xf32> to vector<2x32xf32>
    %c1_94 = arith.constant 1 : index
    %c0_95 = arith.constant 0 : index
    %c0_96 = arith.constant 0 : index
    %236 = vector.load %arg4[%c1_94, %c0_95, %c0_96] : memref<4x32x32xf32, #tpu.memory_space<vmem>>, vector<1x32x32xf32>
    %237 = vector.shape_cast %236 : vector<1x32x32xf32> to vector<32x32xf32>
    %238 = arith.truncf %218 : vector<2x32xf32> to vector<2x32xbf16>
    %239 = arith.truncf %237 : vector<32x32xf32> to vector<32x32xbf16>
    %cst_97 = arith.constant dense<0.000000e+00> : vector<2x32xf32>
    %240 = tpu.matmul %238, %239, %cst_97 {dimension_numbers = #tpu.dot_dimension_numbers<[1], [0], [0], [1], [0, 0, 1, 1], [], []>} : vector<2x32xbf16>, vector<32x32xbf16>, vector<2x32xf32> -> vector<2x32xf32>
    %241 = arith.addf %235, %240 : vector<2x32xf32>
    %242 = arith.negf %241 : vector<2x32xf32>
    %243 = math.exp %242 : vector<2x32xf32>
    %cst_98 = arith.constant 1.000000e+00 : f32
    %244 = vector.broadcast %cst_98 : f32 to vector<2x32xf32>
    %245 = arith.addf %244, %243 : vector<2x32xf32>
    %246 = arith.divf %244, %245 : vector<2x32xf32>
    %247 = vector.extract_strided_slice %28 {offsets = [6, 0], sizes = [2, 32], strides = [1, 1]} : vector<16x32xf32> to vector<2x32xf32>
    %c2_99 = arith.constant 2 : index
    %c0_100 = arith.constant 0 : index
    %c0_101 = arith.constant 0 : index
    %248 = vector.load %arg4[%c2_99, %c0_100, %c0_101] : memref<4x32x32xf32, #tpu.memory_space<vmem>>, vector<1x32x32xf32>
    %249 = vector.shape_cast %248 : vector<1x32x32xf32> to vector<32x32xf32>
    %250 = arith.truncf %218 : vector<2x32xf32> to vector<2x32xbf16>
    %251 = arith.truncf %249 : vector<32x32xf32> to vector<32x32xbf16>
    %cst_102 = arith.constant dense<0.000000e+00> : vector<2x32xf32>
    %252 = tpu.matmul %250, %251, %cst_102 {dimension_numbers = #tpu.dot_dimension_numbers<[1], [0], [0], [1], [0, 0, 1, 1], [], []>} : vector<2x32xbf16>, vector<32x32xbf16>, vector<2x32xf32> -> vector<2x32xf32>
    %253 = arith.addf %247, %252 : vector<2x32xf32>
    %254 = math.tanh %253 : vector<2x32xf32>
    %255 = vector.extract_strided_slice %37 {offsets = [6, 0], sizes = [2, 32], strides = [1, 1]} : vector<16x32xf32> to vector<2x32xf32>
    %c3_103 = arith.constant 3 : index
    %c0_104 = arith.constant 0 : index
    %c0_105 = arith.constant 0 : index
    %256 = vector.load %arg4[%c3_103, %c0_104, %c0_105] : memref<4x32x32xf32, #tpu.memory_space<vmem>>, vector<1x32x32xf32>
    %257 = vector.shape_cast %256 : vector<1x32x32xf32> to vector<32x32xf32>
    %258 = arith.truncf %218 : vector<2x32xf32> to vector<2x32xbf16>
    %259 = arith.truncf %257 : vector<32x32xf32> to vector<32x32xbf16>
    %cst_106 = arith.constant dense<0.000000e+00> : vector<2x32xf32>
    %260 = tpu.matmul %258, %259, %cst_106 {dimension_numbers = #tpu.dot_dimension_numbers<[1], [0], [0], [1], [0, 0, 1, 1], [], []>} : vector<2x32xbf16>, vector<32x32xbf16>, vector<2x32xf32> -> vector<2x32xf32>
    %261 = arith.addf %255, %260 : vector<2x32xf32>
    %262 = arith.negf %261 : vector<2x32xf32>
    %263 = math.exp %262 : vector<2x32xf32>
    %cst_107 = arith.constant 1.000000e+00 : f32
    %264 = vector.broadcast %cst_107 : f32 to vector<2x32xf32>
    %265 = arith.addf %264, %263 : vector<2x32xf32>
    %266 = arith.divf %264, %265 : vector<2x32xf32>
    %267 = arith.mulf %246, %215 : vector<2x32xf32>
    %268 = arith.mulf %234, %254 : vector<2x32xf32>
    %269 = arith.addf %267, %268 : vector<2x32xf32>
    %270 = math.tanh %269 : vector<2x32xf32>
    %271 = arith.mulf %266, %270 : vector<2x32xf32>
    %c3_i32 = arith.constant 3 : i32
    %272 = vector.broadcast %c3_i32 : i32 to vector<2x1xi32>
    %273 = arith.cmpi sgt, %1, %272 : vector<2x1xi32>
    %274 = vector.shape_cast %273 : vector<2x1xi1> to vector<2x1xi1>
    %275 = vector.broadcast %274 : vector<2x1xi1> to vector<2x32xi1>
    %276 = arith.select %275, %269, %215 : vector<2x32xi1>, vector<2x32xf32>
    %277 = vector.shape_cast %273 : vector<2x1xi1> to vector<2x1xi1>
    %278 = vector.broadcast %277 : vector<2x1xi1> to vector<2x32xi1>
    %279 = arith.select %278, %271, %218 : vector<2x32xi1>, vector<2x32xf32>
    %cst_108 = arith.constant 0.000000e+00 : f32
    %280 = vector.shape_cast %273 : vector<2x1xi1> to vector<2x1xi1>
    %281 = vector.broadcast %280 : vector<2x1xi1> to vector<2x32xi1>
    %282 = vector.broadcast %cst_108 : f32 to vector<2x32xf32>
    %283 = arith.select %281, %271, %282 : vector<2x32xi1>, vector<2x32xf32>
    %284 = vector.extract_strided_slice %10 {offsets = [8, 0], sizes = [2, 32], strides = [1, 1]} : vector<16x32xf32> to vector<2x32xf32>
    %c0_109 = arith.constant 0 : index
    %c0_110 = arith.constant 0 : index
    %c0_111 = arith.constant 0 : index
    %285 = vector.load %arg4[%c0_109, %c0_110, %c0_111] : memref<4x32x32xf32, #tpu.memory_space<vmem>>, vector<1x32x32xf32>
    %286 = vector.shape_cast %285 : vector<1x32x32xf32> to vector<32x32xf32>
    %287 = arith.truncf %279 : vector<2x32xf32> to vector<2x32xbf16>
    %288 = arith.truncf %286 : vector<32x32xf32> to vector<32x32xbf16>
    %cst_112 = arith.constant dense<0.000000e+00> : vector<2x32xf32>
    %289 = tpu.matmul %287, %288, %cst_112 {dimension_numbers = #tpu.dot_dimension_numbers<[1], [0], [0], [1], [0, 0, 1, 1], [], []>} : vector<2x32xbf16>, vector<32x32xbf16>, vector<2x32xf32> -> vector<2x32xf32>
    %290 = arith.addf %284, %289 : vector<2x32xf32>
    %291 = arith.negf %290 : vector<2x32xf32>
    %292 = math.exp %291 : vector<2x32xf32>
    %cst_113 = arith.constant 1.000000e+00 : f32
    %293 = vector.broadcast %cst_113 : f32 to vector<2x32xf32>
    %294 = arith.addf %293, %292 : vector<2x32xf32>
    %295 = arith.divf %293, %294 : vector<2x32xf32>
    %296 = vector.extract_strided_slice %19 {offsets = [8, 0], sizes = [2, 32], strides = [1, 1]} : vector<16x32xf32> to vector<2x32xf32>
    %c1_114 = arith.constant 1 : index
    %c0_115 = arith.constant 0 : index
    %c0_116 = arith.constant 0 : index
    %297 = vector.load %arg4[%c1_114, %c0_115, %c0_116] : memref<4x32x32xf32, #tpu.memory_space<vmem>>, vector<1x32x32xf32>
    %298 = vector.shape_cast %297 : vector<1x32x32xf32> to vector<32x32xf32>
    %299 = arith.truncf %279 : vector<2x32xf32> to vector<2x32xbf16>
    %300 = arith.truncf %298 : vector<32x32xf32> to vector<32x32xbf16>
    %cst_117 = arith.constant dense<0.000000e+00> : vector<2x32xf32>
    %301 = tpu.matmul %299, %300, %cst_117 {dimension_numbers = #tpu.dot_dimension_numbers<[1], [0], [0], [1], [0, 0, 1, 1], [], []>} : vector<2x32xbf16>, vector<32x32xbf16>, vector<2x32xf32> -> vector<2x32xf32>
    %302 = arith.addf %296, %301 : vector<2x32xf32>
    %303 = arith.negf %302 : vector<2x32xf32>
    %304 = math.exp %303 : vector<2x32xf32>
    %cst_118 = arith.constant 1.000000e+00 : f32
    %305 = vector.broadcast %cst_118 : f32 to vector<2x32xf32>
    %306 = arith.addf %305, %304 : vector<2x32xf32>
    %307 = arith.divf %305, %306 : vector<2x32xf32>
    %308 = vector.extract_strided_slice %28 {offsets = [8, 0], sizes = [2, 32], strides = [1, 1]} : vector<16x32xf32> to vector<2x32xf32>
    %c2_119 = arith.constant 2 : index
    %c0_120 = arith.constant 0 : index
    %c0_121 = arith.constant 0 : index
    %309 = vector.load %arg4[%c2_119, %c0_120, %c0_121] : memref<4x32x32xf32, #tpu.memory_space<vmem>>, vector<1x32x32xf32>
    %310 = vector.shape_cast %309 : vector<1x32x32xf32> to vector<32x32xf32>
    %311 = arith.truncf %279 : vector<2x32xf32> to vector<2x32xbf16>
    %312 = arith.truncf %310 : vector<32x32xf32> to vector<32x32xbf16>
    %cst_122 = arith.constant dense<0.000000e+00> : vector<2x32xf32>
    %313 = tpu.matmul %311, %312, %cst_122 {dimension_numbers = #tpu.dot_dimension_numbers<[1], [0], [0], [1], [0, 0, 1, 1], [], []>} : vector<2x32xbf16>, vector<32x32xbf16>, vector<2x32xf32> -> vector<2x32xf32>
    %314 = arith.addf %308, %313 : vector<2x32xf32>
    %315 = math.tanh %314 : vector<2x32xf32>
    %316 = vector.extract_strided_slice %37 {offsets = [8, 0], sizes = [2, 32], strides = [1, 1]} : vector<16x32xf32> to vector<2x32xf32>
    %c3_123 = arith.constant 3 : index
    %c0_124 = arith.constant 0 : index
    %c0_125 = arith.constant 0 : index
    %317 = vector.load %arg4[%c3_123, %c0_124, %c0_125] : memref<4x32x32xf32, #tpu.memory_space<vmem>>, vector<1x32x32xf32>
    %318 = vector.shape_cast %317 : vector<1x32x32xf32> to vector<32x32xf32>
    %319 = arith.truncf %279 : vector<2x32xf32> to vector<2x32xbf16>
    %320 = arith.truncf %318 : vector<32x32xf32> to vector<32x32xbf16>
    %cst_126 = arith.constant dense<0.000000e+00> : vector<2x32xf32>
    %321 = tpu.matmul %319, %320, %cst_126 {dimension_numbers = #tpu.dot_dimension_numbers<[1], [0], [0], [1], [0, 0, 1, 1], [], []>} : vector<2x32xbf16>, vector<32x32xbf16>, vector<2x32xf32> -> vector<2x32xf32>
    %322 = arith.addf %316, %321 : vector<2x32xf32>
    %323 = arith.negf %322 : vector<2x32xf32>
    %324 = math.exp %323 : vector<2x32xf32>
    %cst_127 = arith.constant 1.000000e+00 : f32
    %325 = vector.broadcast %cst_127 : f32 to vector<2x32xf32>
    %326 = arith.addf %325, %324 : vector<2x32xf32>
    %327 = arith.divf %325, %326 : vector<2x32xf32>
    %328 = arith.mulf %307, %276 : vector<2x32xf32>
    %329 = arith.mulf %295, %315 : vector<2x32xf32>
    %330 = arith.addf %328, %329 : vector<2x32xf32>
    %331 = math.tanh %330 : vector<2x32xf32>
    %332 = arith.mulf %327, %331 : vector<2x32xf32>
    %c4_i32 = arith.constant 4 : i32
    %333 = vector.broadcast %c4_i32 : i32 to vector<2x1xi32>
    %334 = arith.cmpi sgt, %1, %333 : vector<2x1xi32>
    %335 = vector.shape_cast %334 : vector<2x1xi1> to vector<2x1xi1>
    %336 = vector.broadcast %335 : vector<2x1xi1> to vector<2x32xi1>
    %337 = arith.select %336, %330, %276 : vector<2x32xi1>, vector<2x32xf32>
    %338 = vector.shape_cast %334 : vector<2x1xi1> to vector<2x1xi1>
    %339 = vector.broadcast %338 : vector<2x1xi1> to vector<2x32xi1>
    %340 = arith.select %339, %332, %279 : vector<2x32xi1>, vector<2x32xf32>
    %cst_128 = arith.constant 0.000000e+00 : f32
    %341 = vector.shape_cast %334 : vector<2x1xi1> to vector<2x1xi1>
    %342 = vector.broadcast %341 : vector<2x1xi1> to vector<2x32xi1>
    %343 = vector.broadcast %cst_128 : f32 to vector<2x32xf32>
    %344 = arith.select %342, %332, %343 : vector<2x32xi1>, vector<2x32xf32>
    %345 = vector.extract_strided_slice %10 {offsets = [10, 0], sizes = [2, 32], strides = [1, 1]} : vector<16x32xf32> to vector<2x32xf32>
    %c0_129 = arith.constant 0 : index
    %c0_130 = arith.constant 0 : index
    %c0_131 = arith.constant 0 : index
    %346 = vector.load %arg4[%c0_129, %c0_130, %c0_131] : memref<4x32x32xf32, #tpu.memory_space<vmem>>, vector<1x32x32xf32>
    %347 = vector.shape_cast %346 : vector<1x32x32xf32> to vector<32x32xf32>
    %348 = arith.truncf %340 : vector<2x32xf32> to vector<2x32xbf16>
    %349 = arith.truncf %347 : vector<32x32xf32> to vector<32x32xbf16>
    %cst_132 = arith.constant dense<0.000000e+00> : vector<2x32xf32>
    %350 = tpu.matmul %348, %349, %cst_132 {dimension_numbers = #tpu.dot_dimension_numbers<[1], [0], [0], [1], [0, 0, 1, 1], [], []>} : vector<2x32xbf16>, vector<32x32xbf16>, vector<2x32xf32> -> vector<2x32xf32>
    %351 = arith.addf %345, %350 : vector<2x32xf32>
    %352 = arith.negf %351 : vector<2x32xf32>
    %353 = math.exp %352 : vector<2x32xf32>
    %cst_133 = arith.constant 1.000000e+00 : f32
    %354 = vector.broadcast %cst_133 : f32 to vector<2x32xf32>
    %355 = arith.addf %354, %353 : vector<2x32xf32>
    %356 = arith.divf %354, %355 : vector<2x32xf32>
    %357 = vector.extract_strided_slice %19 {offsets = [10, 0], sizes = [2, 32], strides = [1, 1]} : vector<16x32xf32> to vector<2x32xf32>
    %c1_134 = arith.constant 1 : index
    %c0_135 = arith.constant 0 : index
    %c0_136 = arith.constant 0 : index
    %358 = vector.load %arg4[%c1_134, %c0_135, %c0_136] : memref<4x32x32xf32, #tpu.memory_space<vmem>>, vector<1x32x32xf32>
    %359 = vector.shape_cast %358 : vector<1x32x32xf32> to vector<32x32xf32>
    %360 = arith.truncf %340 : vector<2x32xf32> to vector<2x32xbf16>
    %361 = arith.truncf %359 : vector<32x32xf32> to vector<32x32xbf16>
    %cst_137 = arith.constant dense<0.000000e+00> : vector<2x32xf32>
    %362 = tpu.matmul %360, %361, %cst_137 {dimension_numbers = #tpu.dot_dimension_numbers<[1], [0], [0], [1], [0, 0, 1, 1], [], []>} : vector<2x32xbf16>, vector<32x32xbf16>, vector<2x32xf32> -> vector<2x32xf32>
    %363 = arith.addf %357, %362 : vector<2x32xf32>
    %364 = arith.negf %363 : vector<2x32xf32>
    %365 = math.exp %364 : vector<2x32xf32>
    %cst_138 = arith.constant 1.000000e+00 : f32
    %366 = vector.broadcast %cst_138 : f32 to vector<2x32xf32>
    %367 = arith.addf %366, %365 : vector<2x32xf32>
    %368 = arith.divf %366, %367 : vector<2x32xf32>
    %369 = vector.extract_strided_slice %28 {offsets = [10, 0], sizes = [2, 32], strides = [1, 1]} : vector<16x32xf32> to vector<2x32xf32>
    %c2_139 = arith.constant 2 : index
    %c0_140 = arith.constant 0 : index
    %c0_141 = arith.constant 0 : index
    %370 = vector.load %arg4[%c2_139, %c0_140, %c0_141] : memref<4x32x32xf32, #tpu.memory_space<vmem>>, vector<1x32x32xf32>
    %371 = vector.shape_cast %370 : vector<1x32x32xf32> to vector<32x32xf32>
    %372 = arith.truncf %340 : vector<2x32xf32> to vector<2x32xbf16>
    %373 = arith.truncf %371 : vector<32x32xf32> to vector<32x32xbf16>
    %cst_142 = arith.constant dense<0.000000e+00> : vector<2x32xf32>
    %374 = tpu.matmul %372, %373, %cst_142 {dimension_numbers = #tpu.dot_dimension_numbers<[1], [0], [0], [1], [0, 0, 1, 1], [], []>} : vector<2x32xbf16>, vector<32x32xbf16>, vector<2x32xf32> -> vector<2x32xf32>
    %375 = arith.addf %369, %374 : vector<2x32xf32>
    %376 = math.tanh %375 : vector<2x32xf32>
    %377 = vector.extract_strided_slice %37 {offsets = [10, 0], sizes = [2, 32], strides = [1, 1]} : vector<16x32xf32> to vector<2x32xf32>
    %c3_143 = arith.constant 3 : index
    %c0_144 = arith.constant 0 : index
    %c0_145 = arith.constant 0 : index
    %378 = vector.load %arg4[%c3_143, %c0_144, %c0_145] : memref<4x32x32xf32, #tpu.memory_space<vmem>>, vector<1x32x32xf32>
    %379 = vector.shape_cast %378 : vector<1x32x32xf32> to vector<32x32xf32>
    %380 = arith.truncf %340 : vector<2x32xf32> to vector<2x32xbf16>
    %381 = arith.truncf %379 : vector<32x32xf32> to vector<32x32xbf16>
    %cst_146 = arith.constant dense<0.000000e+00> : vector<2x32xf32>
    %382 = tpu.matmul %380, %381, %cst_146 {dimension_numbers = #tpu.dot_dimension_numbers<[1], [0], [0], [1], [0, 0, 1, 1], [], []>} : vector<2x32xbf16>, vector<32x32xbf16>, vector<2x32xf32> -> vector<2x32xf32>
    %383 = arith.addf %377, %382 : vector<2x32xf32>
    %384 = arith.negf %383 : vector<2x32xf32>
    %385 = math.exp %384 : vector<2x32xf32>
    %cst_147 = arith.constant 1.000000e+00 : f32
    %386 = vector.broadcast %cst_147 : f32 to vector<2x32xf32>
    %387 = arith.addf %386, %385 : vector<2x32xf32>
    %388 = arith.divf %386, %387 : vector<2x32xf32>
    %389 = arith.mulf %368, %337 : vector<2x32xf32>
    %390 = arith.mulf %356, %376 : vector<2x32xf32>
    %391 = arith.addf %389, %390 : vector<2x32xf32>
    %392 = math.tanh %391 : vector<2x32xf32>
    %393 = arith.mulf %388, %392 : vector<2x32xf32>
    %c5_i32 = arith.constant 5 : i32
    %394 = vector.broadcast %c5_i32 : i32 to vector<2x1xi32>
    %395 = arith.cmpi sgt, %1, %394 : vector<2x1xi32>
    %396 = vector.shape_cast %395 : vector<2x1xi1> to vector<2x1xi1>
    %397 = vector.broadcast %396 : vector<2x1xi1> to vector<2x32xi1>
    %398 = arith.select %397, %391, %337 : vector<2x32xi1>, vector<2x32xf32>
    %399 = vector.shape_cast %395 : vector<2x1xi1> to vector<2x1xi1>
    %400 = vector.broadcast %399 : vector<2x1xi1> to vector<2x32xi1>
    %401 = arith.select %400, %393, %340 : vector<2x32xi1>, vector<2x32xf32>
    %cst_148 = arith.constant 0.000000e+00 : f32
    %402 = vector.shape_cast %395 : vector<2x1xi1> to vector<2x1xi1>
    %403 = vector.broadcast %402 : vector<2x1xi1> to vector<2x32xi1>
    %404 = vector.broadcast %cst_148 : f32 to vector<2x32xf32>
    %405 = arith.select %403, %393, %404 : vector<2x32xi1>, vector<2x32xf32>
    %406 = vector.extract_strided_slice %10 {offsets = [12, 0], sizes = [2, 32], strides = [1, 1]} : vector<16x32xf32> to vector<2x32xf32>
    %c0_149 = arith.constant 0 : index
    %c0_150 = arith.constant 0 : index
    %c0_151 = arith.constant 0 : index
    %407 = vector.load %arg4[%c0_149, %c0_150, %c0_151] : memref<4x32x32xf32, #tpu.memory_space<vmem>>, vector<1x32x32xf32>
    %408 = vector.shape_cast %407 : vector<1x32x32xf32> to vector<32x32xf32>
    %409 = arith.truncf %401 : vector<2x32xf32> to vector<2x32xbf16>
    %410 = arith.truncf %408 : vector<32x32xf32> to vector<32x32xbf16>
    %cst_152 = arith.constant dense<0.000000e+00> : vector<2x32xf32>
    %411 = tpu.matmul %409, %410, %cst_152 {dimension_numbers = #tpu.dot_dimension_numbers<[1], [0], [0], [1], [0, 0, 1, 1], [], []>} : vector<2x32xbf16>, vector<32x32xbf16>, vector<2x32xf32> -> vector<2x32xf32>
    %412 = arith.addf %406, %411 : vector<2x32xf32>
    %413 = arith.negf %412 : vector<2x32xf32>
    %414 = math.exp %413 : vector<2x32xf32>
    %cst_153 = arith.constant 1.000000e+00 : f32
    %415 = vector.broadcast %cst_153 : f32 to vector<2x32xf32>
    %416 = arith.addf %415, %414 : vector<2x32xf32>
    %417 = arith.divf %415, %416 : vector<2x32xf32>
    %418 = vector.extract_strided_slice %19 {offsets = [12, 0], sizes = [2, 32], strides = [1, 1]} : vector<16x32xf32> to vector<2x32xf32>
    %c1_154 = arith.constant 1 : index
    %c0_155 = arith.constant 0 : index
    %c0_156 = arith.constant 0 : index
    %419 = vector.load %arg4[%c1_154, %c0_155, %c0_156] : memref<4x32x32xf32, #tpu.memory_space<vmem>>, vector<1x32x32xf32>
    %420 = vector.shape_cast %419 : vector<1x32x32xf32> to vector<32x32xf32>
    %421 = arith.truncf %401 : vector<2x32xf32> to vector<2x32xbf16>
    %422 = arith.truncf %420 : vector<32x32xf32> to vector<32x32xbf16>
    %cst_157 = arith.constant dense<0.000000e+00> : vector<2x32xf32>
    %423 = tpu.matmul %421, %422, %cst_157 {dimension_numbers = #tpu.dot_dimension_numbers<[1], [0], [0], [1], [0, 0, 1, 1], [], []>} : vector<2x32xbf16>, vector<32x32xbf16>, vector<2x32xf32> -> vector<2x32xf32>
    %424 = arith.addf %418, %423 : vector<2x32xf32>
    %425 = arith.negf %424 : vector<2x32xf32>
    %426 = math.exp %425 : vector<2x32xf32>
    %cst_158 = arith.constant 1.000000e+00 : f32
    %427 = vector.broadcast %cst_158 : f32 to vector<2x32xf32>
    %428 = arith.addf %427, %426 : vector<2x32xf32>
    %429 = arith.divf %427, %428 : vector<2x32xf32>
    %430 = vector.extract_strided_slice %28 {offsets = [12, 0], sizes = [2, 32], strides = [1, 1]} : vector<16x32xf32> to vector<2x32xf32>
    %c2_159 = arith.constant 2 : index
    %c0_160 = arith.constant 0 : index
    %c0_161 = arith.constant 0 : index
    %431 = vector.load %arg4[%c2_159, %c0_160, %c0_161] : memref<4x32x32xf32, #tpu.memory_space<vmem>>, vector<1x32x32xf32>
    %432 = vector.shape_cast %431 : vector<1x32x32xf32> to vector<32x32xf32>
    %433 = arith.truncf %401 : vector<2x32xf32> to vector<2x32xbf16>
    %434 = arith.truncf %432 : vector<32x32xf32> to vector<32x32xbf16>
    %cst_162 = arith.constant dense<0.000000e+00> : vector<2x32xf32>
    %435 = tpu.matmul %433, %434, %cst_162 {dimension_numbers = #tpu.dot_dimension_numbers<[1], [0], [0], [1], [0, 0, 1, 1], [], []>} : vector<2x32xbf16>, vector<32x32xbf16>, vector<2x32xf32> -> vector<2x32xf32>
    %436 = arith.addf %430, %435 : vector<2x32xf32>
    %437 = math.tanh %436 : vector<2x32xf32>
    %438 = vector.extract_strided_slice %37 {offsets = [12, 0], sizes = [2, 32], strides = [1, 1]} : vector<16x32xf32> to vector<2x32xf32>
    %c3_163 = arith.constant 3 : index
    %c0_164 = arith.constant 0 : index
    %c0_165 = arith.constant 0 : index
    %439 = vector.load %arg4[%c3_163, %c0_164, %c0_165] : memref<4x32x32xf32, #tpu.memory_space<vmem>>, vector<1x32x32xf32>
    %440 = vector.shape_cast %439 : vector<1x32x32xf32> to vector<32x32xf32>
    %441 = arith.truncf %401 : vector<2x32xf32> to vector<2x32xbf16>
    %442 = arith.truncf %440 : vector<32x32xf32> to vector<32x32xbf16>
    %cst_166 = arith.constant dense<0.000000e+00> : vector<2x32xf32>
    %443 = tpu.matmul %441, %442, %cst_166 {dimension_numbers = #tpu.dot_dimension_numbers<[1], [0], [0], [1], [0, 0, 1, 1], [], []>} : vector<2x32xbf16>, vector<32x32xbf16>, vector<2x32xf32> -> vector<2x32xf32>
    %444 = arith.addf %438, %443 : vector<2x32xf32>
    %445 = arith.negf %444 : vector<2x32xf32>
    %446 = math.exp %445 : vector<2x32xf32>
    %cst_167 = arith.constant 1.000000e+00 : f32
    %447 = vector.broadcast %cst_167 : f32 to vector<2x32xf32>
    %448 = arith.addf %447, %446 : vector<2x32xf32>
    %449 = arith.divf %447, %448 : vector<2x32xf32>
    %450 = arith.mulf %429, %398 : vector<2x32xf32>
    %451 = arith.mulf %417, %437 : vector<2x32xf32>
    %452 = arith.addf %450, %451 : vector<2x32xf32>
    %453 = math.tanh %452 : vector<2x32xf32>
    %454 = arith.mulf %449, %453 : vector<2x32xf32>
    %c6_i32 = arith.constant 6 : i32
    %455 = vector.broadcast %c6_i32 : i32 to vector<2x1xi32>
    %456 = arith.cmpi sgt, %1, %455 : vector<2x1xi32>
    %457 = vector.shape_cast %456 : vector<2x1xi1> to vector<2x1xi1>
    %458 = vector.broadcast %457 : vector<2x1xi1> to vector<2x32xi1>
    %459 = arith.select %458, %452, %398 : vector<2x32xi1>, vector<2x32xf32>
    %460 = vector.shape_cast %456 : vector<2x1xi1> to vector<2x1xi1>
    %461 = vector.broadcast %460 : vector<2x1xi1> to vector<2x32xi1>
    %462 = arith.select %461, %454, %401 : vector<2x32xi1>, vector<2x32xf32>
    %cst_168 = arith.constant 0.000000e+00 : f32
    %463 = vector.shape_cast %456 : vector<2x1xi1> to vector<2x1xi1>
    %464 = vector.broadcast %463 : vector<2x1xi1> to vector<2x32xi1>
    %465 = vector.broadcast %cst_168 : f32 to vector<2x32xf32>
    %466 = arith.select %464, %454, %465 : vector<2x32xi1>, vector<2x32xf32>
    %467 = vector.extract_strided_slice %10 {offsets = [14, 0], sizes = [2, 32], strides = [1, 1]} : vector<16x32xf32> to vector<2x32xf32>
    %c0_169 = arith.constant 0 : index
    %c0_170 = arith.constant 0 : index
    %c0_171 = arith.constant 0 : index
    %468 = vector.load %arg4[%c0_169, %c0_170, %c0_171] : memref<4x32x32xf32, #tpu.memory_space<vmem>>, vector<1x32x32xf32>
    %469 = vector.shape_cast %468 : vector<1x32x32xf32> to vector<32x32xf32>
    %470 = arith.truncf %462 : vector<2x32xf32> to vector<2x32xbf16>
    %471 = arith.truncf %469 : vector<32x32xf32> to vector<32x32xbf16>
    %cst_172 = arith.constant dense<0.000000e+00> : vector<2x32xf32>
    %472 = tpu.matmul %470, %471, %cst_172 {dimension_numbers = #tpu.dot_dimension_numbers<[1], [0], [0], [1], [0, 0, 1, 1], [], []>} : vector<2x32xbf16>, vector<32x32xbf16>, vector<2x32xf32> -> vector<2x32xf32>
    %473 = arith.addf %467, %472 : vector<2x32xf32>
    %474 = arith.negf %473 : vector<2x32xf32>
    %475 = math.exp %474 : vector<2x32xf32>
    %cst_173 = arith.constant 1.000000e+00 : f32
    %476 = vector.broadcast %cst_173 : f32 to vector<2x32xf32>
    %477 = arith.addf %476, %475 : vector<2x32xf32>
    %478 = arith.divf %476, %477 : vector<2x32xf32>
    %479 = vector.extract_strided_slice %19 {offsets = [14, 0], sizes = [2, 32], strides = [1, 1]} : vector<16x32xf32> to vector<2x32xf32>
    %c1_174 = arith.constant 1 : index
    %c0_175 = arith.constant 0 : index
    %c0_176 = arith.constant 0 : index
    %480 = vector.load %arg4[%c1_174, %c0_175, %c0_176] : memref<4x32x32xf32, #tpu.memory_space<vmem>>, vector<1x32x32xf32>
    %481 = vector.shape_cast %480 : vector<1x32x32xf32> to vector<32x32xf32>
    %482 = arith.truncf %462 : vector<2x32xf32> to vector<2x32xbf16>
    %483 = arith.truncf %481 : vector<32x32xf32> to vector<32x32xbf16>
    %cst_177 = arith.constant dense<0.000000e+00> : vector<2x32xf32>
    %484 = tpu.matmul %482, %483, %cst_177 {dimension_numbers = #tpu.dot_dimension_numbers<[1], [0], [0], [1], [0, 0, 1, 1], [], []>} : vector<2x32xbf16>, vector<32x32xbf16>, vector<2x32xf32> -> vector<2x32xf32>
    %485 = arith.addf %479, %484 : vector<2x32xf32>
    %486 = arith.negf %485 : vector<2x32xf32>
    %487 = math.exp %486 : vector<2x32xf32>
    %cst_178 = arith.constant 1.000000e+00 : f32
    %488 = vector.broadcast %cst_178 : f32 to vector<2x32xf32>
    %489 = arith.addf %488, %487 : vector<2x32xf32>
    %490 = arith.divf %488, %489 : vector<2x32xf32>
    %491 = vector.extract_strided_slice %28 {offsets = [14, 0], sizes = [2, 32], strides = [1, 1]} : vector<16x32xf32> to vector<2x32xf32>
    %c2_179 = arith.constant 2 : index
    %c0_180 = arith.constant 0 : index
    %c0_181 = arith.constant 0 : index
    %492 = vector.load %arg4[%c2_179, %c0_180, %c0_181] : memref<4x32x32xf32, #tpu.memory_space<vmem>>, vector<1x32x32xf32>
    %493 = vector.shape_cast %492 : vector<1x32x32xf32> to vector<32x32xf32>
    %494 = arith.truncf %462 : vector<2x32xf32> to vector<2x32xbf16>
    %495 = arith.truncf %493 : vector<32x32xf32> to vector<32x32xbf16>
    %cst_182 = arith.constant dense<0.000000e+00> : vector<2x32xf32>
    %496 = tpu.matmul %494, %495, %cst_182 {dimension_numbers = #tpu.dot_dimension_numbers<[1], [0], [0], [1], [0, 0, 1, 1], [], []>} : vector<2x32xbf16>, vector<32x32xbf16>, vector<2x32xf32> -> vector<2x32xf32>
    %497 = arith.addf %491, %496 : vector<2x32xf32>
    %498 = math.tanh %497 : vector<2x32xf32>
    %499 = vector.extract_strided_slice %37 {offsets = [14, 0], sizes = [2, 32], strides = [1, 1]} : vector<16x32xf32> to vector<2x32xf32>
    %c3_183 = arith.constant 3 : index
    %c0_184 = arith.constant 0 : index
    %c0_185 = arith.constant 0 : index
    %500 = vector.load %arg4[%c3_183, %c0_184, %c0_185] : memref<4x32x32xf32, #tpu.memory_space<vmem>>, vector<1x32x32xf32>
    %501 = vector.shape_cast %500 : vector<1x32x32xf32> to vector<32x32xf32>
    %502 = arith.truncf %462 : vector<2x32xf32> to vector<2x32xbf16>
    %503 = arith.truncf %501 : vector<32x32xf32> to vector<32x32xbf16>
    %cst_186 = arith.constant dense<0.000000e+00> : vector<2x32xf32>
    %504 = tpu.matmul %502, %503, %cst_186 {dimension_numbers = #tpu.dot_dimension_numbers<[1], [0], [0], [1], [0, 0, 1, 1], [], []>} : vector<2x32xbf16>, vector<32x32xbf16>, vector<2x32xf32> -> vector<2x32xf32>
    %505 = arith.addf %499, %504 : vector<2x32xf32>
    %506 = arith.negf %505 : vector<2x32xf32>
    %507 = math.exp %506 : vector<2x32xf32>
    %cst_187 = arith.constant 1.000000e+00 : f32
    %508 = vector.broadcast %cst_187 : f32 to vector<2x32xf32>
    %509 = arith.addf %508, %507 : vector<2x32xf32>
    %510 = arith.divf %508, %509 : vector<2x32xf32>
    %511 = arith.mulf %490, %459 : vector<2x32xf32>
    %512 = arith.mulf %478, %498 : vector<2x32xf32>
    %513 = arith.addf %511, %512 : vector<2x32xf32>
    %514 = math.tanh %513 : vector<2x32xf32>
    %515 = arith.mulf %510, %514 : vector<2x32xf32>
    %c7_i32 = arith.constant 7 : i32
    %516 = vector.broadcast %c7_i32 : i32 to vector<2x1xi32>
    %517 = arith.cmpi sgt, %1, %516 : vector<2x1xi32>
    %cst_188 = arith.constant 0.000000e+00 : f32
    %518 = vector.shape_cast %517 : vector<2x1xi1> to vector<2x1xi1>
    %519 = vector.broadcast %518 : vector<2x1xi1> to vector<2x32xi1>
    %520 = vector.broadcast %cst_188 : f32 to vector<2x32xf32>
    %521 = arith.select %519, %515, %520 : vector<2x32xi1>, vector<2x32xf32>
    %522 = tpu.concatenate %100, %161, %222, %283, %344, %405, %466, %521 in 0 : vector<2x32xf32>, vector<2x32xf32>, vector<2x32xf32>, vector<2x32xf32>, vector<2x32xf32>, vector<2x32xf32>, vector<2x32xf32>, vector<2x32xf32> -> vector<16x32xf32>
    %c0_189 = arith.constant 0 : index
    %c0_190 = arith.constant 0 : index
    %523 = vector.load %arg6[%c0_189, %c0_190] : memref<32x16xf32, #tpu.memory_space<vmem>>, vector<32x16xf32>
    %524 = arith.truncf %522 : vector<16x32xf32> to vector<16x32xbf16>
    %525 = arith.truncf %523 : vector<32x16xf32> to vector<32x16xbf16>
    %cst_191 = arith.constant dense<0.000000e+00> : vector<16x16xf32>
    %526 = tpu.matmul %524, %525, %cst_191 {dimension_numbers = #tpu.dot_dimension_numbers<[1], [0], [0], [1], [0, 0, 1, 1], [], []>} : vector<16x32xbf16>, vector<32x16xbf16>, vector<16x16xf32> -> vector<16x16xf32>
    %c0_192 = arith.constant 0 : index
    %c0_193 = arith.constant 0 : index
    %527 = vector.load %arg7[%c0_192, %c0_193] : memref<1x16xf32, #tpu.memory_space<vmem>>, vector<1x16xf32>
    %528 = vector.broadcast %527 : vector<1x16xf32> to vector<16x16xf32>
    %529 = arith.addf %526, %528 : vector<16x16xf32>
    %cst_194 = arith.constant 0.000000e+00 : f32
    %530 = vector.broadcast %cst_194 : f32 to vector<4x16xf32>
    %531 = tpu.concatenate %530, %529, %530 in 0 : vector<4x16xf32>, vector<16x16xf32>, vector<4x16xf32> -> vector<24x16xf32>
    %cst_195 = arith.constant 0.000000e+00 : f32
    %532 = vector.broadcast %cst_195 : f32 to vector<16x16xf32>
    %533 = vector.extract_strided_slice %531 {offsets = [0, 0], sizes = [16, 16], strides = [1, 1]} : vector<24x16xf32> to vector<16x16xf32>
    %c0_196 = arith.constant 0 : index
    %c0_197 = arith.constant 0 : index
    %c0_198 = arith.constant 0 : index
    %534 = vector.load %arg8[%c0_196, %c0_197, %c0_198] : memref<5x16x16xf32, #tpu.memory_space<vmem>>, vector<1x16x16xf32>
    %535 = vector.shape_cast %534 : vector<1x16x16xf32> to vector<16x16xf32>
    %536 = arith.truncf %533 : vector<16x16xf32> to vector<16x16xbf16>
    %537 = arith.truncf %535 : vector<16x16xf32> to vector<16x16xbf16>
    %cst_199 = arith.constant dense<0.000000e+00> : vector<16x16xf32>
    %538 = tpu.matmul %536, %537, %cst_199 {dimension_numbers = #tpu.dot_dimension_numbers<[1], [0], [0], [1], [0, 0, 1, 1], [], []>} : vector<16x16xbf16>, vector<16x16xbf16>, vector<16x16xf32> -> vector<16x16xf32>
    %539 = arith.addf %532, %538 : vector<16x16xf32>
    %540 = vector.extract_strided_slice %531 {offsets = [2, 0], sizes = [16, 16], strides = [1, 1]} : vector<24x16xf32> to vector<16x16xf32>
    %c1_200 = arith.constant 1 : index
    %c0_201 = arith.constant 0 : index
    %c0_202 = arith.constant 0 : index
    %541 = vector.load %arg8[%c1_200, %c0_201, %c0_202] : memref<5x16x16xf32, #tpu.memory_space<vmem>>, vector<1x16x16xf32>
    %542 = vector.shape_cast %541 : vector<1x16x16xf32> to vector<16x16xf32>
    %543 = arith.truncf %540 : vector<16x16xf32> to vector<16x16xbf16>
    %544 = arith.truncf %542 : vector<16x16xf32> to vector<16x16xbf16>
    %cst_203 = arith.constant dense<0.000000e+00> : vector<16x16xf32>
    %545 = tpu.matmul %543, %544, %cst_203 {dimension_numbers = #tpu.dot_dimension_numbers<[1], [0], [0], [1], [0, 0, 1, 1], [], []>} : vector<16x16xbf16>, vector<16x16xbf16>, vector<16x16xf32> -> vector<16x16xf32>
    %546 = arith.addf %539, %545 : vector<16x16xf32>
    %547 = vector.extract_strided_slice %531 {offsets = [4, 0], sizes = [16, 16], strides = [1, 1]} : vector<24x16xf32> to vector<16x16xf32>
    %c2_204 = arith.constant 2 : index
    %c0_205 = arith.constant 0 : index
    %c0_206 = arith.constant 0 : index
    %548 = vector.load %arg8[%c2_204, %c0_205, %c0_206] : memref<5x16x16xf32, #tpu.memory_space<vmem>>, vector<1x16x16xf32>
    %549 = vector.shape_cast %548 : vector<1x16x16xf32> to vector<16x16xf32>
    %550 = arith.truncf %547 : vector<16x16xf32> to vector<16x16xbf16>
    %551 = arith.truncf %549 : vector<16x16xf32> to vector<16x16xbf16>
    %cst_207 = arith.constant dense<0.000000e+00> : vector<16x16xf32>
    %552 = tpu.matmul %550, %551, %cst_207 {dimension_numbers = #tpu.dot_dimension_numbers<[1], [0], [0], [1], [0, 0, 1, 1], [], []>} : vector<16x16xbf16>, vector<16x16xbf16>, vector<16x16xf32> -> vector<16x16xf32>
    %553 = arith.addf %546, %552 : vector<16x16xf32>
    %554 = vector.extract_strided_slice %531 {offsets = [6, 0], sizes = [16, 16], strides = [1, 1]} : vector<24x16xf32> to vector<16x16xf32>
    %c3_208 = arith.constant 3 : index
    %c0_209 = arith.constant 0 : index
    %c0_210 = arith.constant 0 : index
    %555 = vector.load %arg8[%c3_208, %c0_209, %c0_210] : memref<5x16x16xf32, #tpu.memory_space<vmem>>, vector<1x16x16xf32>
    %556 = vector.shape_cast %555 : vector<1x16x16xf32> to vector<16x16xf32>
    %557 = arith.truncf %554 : vector<16x16xf32> to vector<16x16xbf16>
    %558 = arith.truncf %556 : vector<16x16xf32> to vector<16x16xbf16>
    %cst_211 = arith.constant dense<0.000000e+00> : vector<16x16xf32>
    %559 = tpu.matmul %557, %558, %cst_211 {dimension_numbers = #tpu.dot_dimension_numbers<[1], [0], [0], [1], [0, 0, 1, 1], [], []>} : vector<16x16xbf16>, vector<16x16xbf16>, vector<16x16xf32> -> vector<16x16xf32>
    %560 = arith.addf %553, %559 : vector<16x16xf32>
    %561 = vector.extract_strided_slice %531 {offsets = [8, 0], sizes = [16, 16], strides = [1, 1]} : vector<24x16xf32> to vector<16x16xf32>
    %c4 = arith.constant 4 : index
    %c0_212 = arith.constant 0 : index
    %c0_213 = arith.constant 0 : index
    %562 = vector.load %arg8[%c4, %c0_212, %c0_213] : memref<5x16x16xf32, #tpu.memory_space<vmem>>, vector<1x16x16xf32>
    %563 = vector.shape_cast %562 : vector<1x16x16xf32> to vector<16x16xf32>
    %564 = arith.truncf %561 : vector<16x16xf32> to vector<16x16xbf16>
    %565 = arith.truncf %563 : vector<16x16xf32> to vector<16x16xbf16>
    %cst_214 = arith.constant dense<0.000000e+00> : vector<16x16xf32>
    %566 = tpu.matmul %564, %565, %cst_214 {dimension_numbers = #tpu.dot_dimension_numbers<[1], [0], [0], [1], [0, 0, 1, 1], [], []>} : vector<16x16xbf16>, vector<16x16xbf16>, vector<16x16xf32> -> vector<16x16xf32>
    %567 = arith.addf %560, %566 : vector<16x16xf32>
    %c0_215 = arith.constant 0 : index
    %c0_216 = arith.constant 0 : index
    %568 = vector.load %arg9[%c0_215, %c0_216] : memref<1x16xf32, #tpu.memory_space<vmem>>, vector<1x16xf32>
    %569 = vector.broadcast %568 : vector<1x16xf32> to vector<16x16xf32>
    %570 = arith.addf %567, %569 : vector<16x16xf32>
    %571 = math.tanh %570 : vector<16x16xf32>
    %572 = arith.addf %529, %571 : vector<16x16xf32>
    %c0_217 = arith.constant 0 : index
    %c0_218 = arith.constant 0 : index
    %573 = vector.load %arg10[%c0_217, %c0_218] : memref<16x8xf32, #tpu.memory_space<vmem>>, vector<16x8xf32>
    %574 = arith.truncf %572 : vector<16x16xf32> to vector<16x16xbf16>
    %575 = arith.truncf %573 : vector<16x8xf32> to vector<16x8xbf16>
    %cst_219 = arith.constant dense<0.000000e+00> : vector<16x8xf32>
    %576 = tpu.matmul %574, %575, %cst_219 {dimension_numbers = #tpu.dot_dimension_numbers<[1], [0], [0], [1], [0, 0, 1, 1], [], []>} : vector<16x16xbf16>, vector<16x8xbf16>, vector<16x8xf32> -> vector<16x8xf32>
    %c0_220 = arith.constant 0 : index
    %c0_221 = arith.constant 0 : index
    %577 = vector.load %arg11[%c0_220, %c0_221] : memref<1x8xf32, #tpu.memory_space<vmem>>, vector<1x8xf32>
    %578 = vector.broadcast %577 : vector<1x8xf32> to vector<16x8xf32>
    %579 = arith.addf %576, %578 : vector<16x8xf32>
    %c0_222 = arith.constant 0 : index
    %c0_223 = arith.constant 0 : index
    %580 = vector.load %arg12[%c0_222, %c0_223] : memref<16x8xf32, #tpu.memory_space<vmem>>, vector<16x8xf32>
    tpu.vector_store %arg12[%c0_222, %c0_223], %579 {strides = array<i32>} : memref<16x8xf32, #tpu.memory_space<vmem>>, vector<16x8xf32>,
    return
  }
  func.func @transform_0(%arg0: i32) -> (i32, i32) {
    %c0_i32 = arith.constant 0 : i32
    %c0_i32_0 = arith.constant 0 : i32
    %c0_i32_1 = arith.constant 0 : i32
    return %c0_i32, %c0_i32_0 : i32, i32
  }
  func.func @transform_1(%arg0: i32) -> (i32, i32) {
    %c0_i32 = arith.constant 0 : i32
    %c0_i32_0 = arith.constant 0 : i32
    %c0_i32_1 = arith.constant 0 : i32
    return %c0_i32, %c0_i32_0 : i32, i32
  }
  func.func @transform_2(%arg0: i32) -> (i32, i32, i32) {
    %c0_i32 = arith.constant 0 : i32
    %c0_i32_0 = arith.constant 0 : i32
    %c0_i32_1 = arith.constant 0 : i32
    %c0_i32_2 = arith.constant 0 : i32
    return %c0_i32, %c0_i32_0, %c0_i32_1 : i32, i32, i32
  }
  func.func @transform_3(%arg0: i32) -> (i32, i32, i32) {
    %c0_i32 = arith.constant 0 : i32
    %c0_i32_0 = arith.constant 0 : i32
    %c0_i32_1 = arith.constant 0 : i32
    %c0_i32_2 = arith.constant 0 : i32
    return %c0_i32, %c0_i32_0, %c0_i32_1 : i32, i32, i32
  }
  func.func @transform_4(%arg0: i32) -> (i32, i32, i32) {
    %c0_i32 = arith.constant 0 : i32
    %c0_i32_0 = arith.constant 0 : i32
    %c0_i32_1 = arith.constant 0 : i32
    %c0_i32_2 = arith.constant 0 : i32
    return %c0_i32, %c0_i32_0, %c0_i32_1 : i32, i32, i32
  }
  func.func @transform_5(%arg0: i32) -> (i32, i32) {
    %c0_i32 = arith.constant 0 : i32
    %c0_i32_0 = arith.constant 0 : i32
    %c0_i32_1 = arith.constant 0 : i32
    return %c0_i32, %c0_i32_0 : i32, i32
  }
  func.func @transform_6(%arg0: i32) -> (i32, i32) {
    %c0_i32 = arith.constant 0 : i32
    %c0_i32_0 = arith.constant 0 : i32
    %c0_i32_1 = arith.constant 0 : i32
    return %c0_i32, %c0_i32_0 : i32, i32
  }
  func.func @transform_7(%arg0: i32) -> (i32, i32, i32) {
    %c0_i32 = arith.constant 0 : i32
    %c0_i32_0 = arith.constant 0 : i32
    %c0_i32_1 = arith.constant 0 : i32
    %c0_i32_2 = arith.constant 0 : i32
    return %c0_i32, %c0_i32_0, %c0_i32_1 : i32, i32, i32
  }
  func.func @transform_8(%arg0: i32) -> (i32, i32) {
    %c0_i32 = arith.constant 0 : i32
    %c0_i32_0 = arith.constant 0 : i32
    %c0_i32_1 = arith.constant 0 : i32
    return %c0_i32, %c0_i32_0 : i32, i32
  }
  func.func @transform_9(%arg0: i32) -> (i32, i32) {
    %c0_i32 = arith.constant 0 : i32
    %c0_i32_0 = arith.constant 0 : i32
    %c0_i32_1 = arith.constant 0 : i32
    return %c0_i32, %c0_i32_0 : i32, i32
  }
  func.func @transform_10(%arg0: i32) -> (i32, i32) {
    %c0_i32 = arith.constant 0 : i32
    %c0_i32_0 = arith.constant 0 : i32
    %c0_i32_1 = arith.constant 0 : i32
    return %c0_i32, %c0_i32_0 : i32, i32
  }
  func.func @transform_11(%arg0: i32) -> (i32, i32) {
    %c0_i32 = arith.constant 0 : i32
    %c0_i32_0 = arith.constant 0 : i32
    %c0_i32_1 = arith.constant 0 : i32
    return %c0_i32, %c0_i32_0 : i32, i32
  }
}

</mosaic_0001>

<bundles_post_ra>
// kernel: _generate.1
= control target key start
LH: loop header
LB: loop body
LE: loop exit
PB: predicated region body
PF: predicated region fallthrough
CT: control target
= control target key end

     0   :  { %16 = vsyncpa [#allocation3], 0  ;;  %s3187_s17 = smov [#allocation2]   ;;  %s3866_s0 = inlined_call_operand.vmem [shape: f32[16,32], index: 0, kind: input, shape index: {}]   ;;  %s3867_s1 = inlined_call_operand.vmem [shape: s32[2,1], index: 1, kind: input, shape index: {}]   ;;  %s3868_s2 = inlined_call_operand.vmem [shape: f32[4,32,32], index: 2, kind: input, shape index: {}]   ;;  %s3869_s3 = inlined_call_operand.vmem [shape: f32[4,32,32], index: 3, kind: input, shape index: {}]   ;;  %s3870_s4 = inlined_call_operand.vmem [shape: f32[4,1,32], index: 4, kind: input, shape index: {}]   ;;  %s3871_s5 = inlined_call_operand.vmem [shape: f32[32,16], index: 5, kind: input, shape index: {}]   ;;  %s3872_s6 = inlined_call_operand.vmem [shape: f32[1,16], index: 6, kind: input, shape index: {}]   ;;  %s3873_s7 = inlined_call_operand.hbm [shape: f32[5,16,16], index: 7, kind: input, shape index: {}]   ;;  %s3874_s8 = inlined_call_operand.vmem [shape: f32[1,16], index: 8, kind: input, shape index: {}]   ;;  %s3875_s9 = inlined_call_operand.vmem [shape: f32[16,8], index: 9, kind: input, shape index: {}]   ;;  %s3876_s10 = inlined_call_operand.vmem [shape: f32[1,8], index: 10, kind: input, shape index: {}]   ;;  %s3877_s11 = inlined_call_operand.vmem [shape: f32[16,8], index: 11, kind: output, shape index: {}]  }
   0x1   :  { %s36_s18 = sshll.u32 %s3187_s17, 4  ;;  %s3163_s21 = scalar_lea.hbm %s3873_s7, 1280  ;;  %s37_s18 = int_to_ptr.vmem [resolvable:$true] %s36_s18 }
   0x2   :  { %p3164_p0 = scmp.ne.s32.totalorder %s3873_s7, %s3163_s21  ;;  %p3167_p1 = scmp.lt.u32.totalorder %s3163_s21, %s3873_s7 }
   0x4   :  { %p3169_p2 = pnand %p3167_p1, %p3164_p0 }
   0x6   :  { %3172 = shalt.err (!%p3169_p2)
}
   0x7   :  { %s3173_s26 = scalar_lea.vmem %s37_s18, 1280  ;;  %p3178_p4 = scmp.lt.s32.totalorder %s37_s18, %s37_s18 }
   0x8   :  { %p3174_p3 = scmp.ne.s32.totalorder %s37_s18, %s3173_s26  ;;  %p3179_p5 = scmp.lt.s32.totalorder %s3173_s26, %s3173_s26 }
   0xa   :  { %p3180_p6 = por %p3179_p5, %p3178_p4 }
   0xc   :  { %p3181_p7 = pnand %p3180_p6, %p3174_p3 }
   0xe   :  { %3184 = shalt.err (!%p3181_p7)
}
   0xf   :  { %s3188_s27 = smov 128   ;;  %s3189_s28 = smov 8  }
  0x10   :  { %42 = dma.hbm_to_vmem [thread:$0]  %s3873_s7, 1280, %s37_s18, [#allocation3], %s3188_s27, %s3188_s27, %s3189_s28  }
  0x11   :  { %3185 = dma.done.wait [#allocation3], 1280  }
  0x12   :  { %3186 = vsyncadd [#allocation3], 4294966016  ;;  %v3190_v0 = vmov 0.0   ;;  %vm3191_vm0 = vmmov 0   ;;  %v3192_v1 = vmov 0   ;;  %v56_v2 = vld [vmem:[%s3868_s2] sm:$0xff] }
  0x13   :  { %2691 = vmatprep.subr.bf16.mxu0 %v3190_v0  ;;  %2699 = vmatprep.subr.bf16.mxu1 %v3190_v0  ;;  %v57_v3 = vld [vmem:[%s3868_s2 + $0x8] sm:$0xff]  ;;  %v2473_v4 = vld [vmem:[%s3868_s2 + $0x20] sm:$0xff]  ;;  %v58_v7 = vld [vmem:[%s3868_s2 + $0x10] sm:$0xff]  ;;  %vm70_vm1 = vcmask 261120   ;;  %vm2055_vm13 = vcmask 1041408   ;;  %vm2057_vm14 = vcmask 1043456  }
  0x14   :  { %2695 = vmatprep.mubr.msk.bf16.mxu0 %vm3191_vm0, %v3190_v0  ;;  %2703 = vmatprep.mubr.msk.bf16.mxu1 %vm3191_vm0, %v3190_v0  ;;  %v61_v5 = vpack.c.bf16 %v57_v3, %v56_v2  ;;  %v2474_v6 = vld [vmem:[%s3868_s2 + $0x28] sm:$0xff]  ;;  %v59_v8 = vld [vmem:[%s3868_s2 + $0x18] sm:$0xff]  ;;  %v2475_v10 = vld [vmem:[%s3868_s2 + $0x30] sm:$0xff] }
  0x15   :  { %3029 = vset.pattern.permute.xlu0 %v3192_v1  ;;  %3030 = vset.pattern.permute.xlu1 %v3192_v1  ;;  %v120_v9 = vpack.c.bf16 %v2474_v6, %v2473_v4  ;;  %v2476_v11 = vld [vmem:[%s3868_s2 + $0x38] sm:$0xff]  ;;  %v62_v12 = vpack.c.bf16 %v59_v8, %v58_v7  ;;  %v53_v13 = vld [vmem:[%s3866_s0] sm:$0xff]  ;;  %v54_v14 = vld [vmem:[%s3866_s0 + $0x8] sm:$0xff] }
  0x16   :  { %2692 = vmatpush3.bf16.msra.mxu0 %v61_v5  ;;  %v121_v15 = vpack.c.bf16 %v2476_v11, %v2475_v10  ;;  %v2480_v16 = vld [vmem:[%s3868_s2 + $0x40] sm:$0xff]  ;;  %v2481_v17 = vld [vmem:[%s3868_s2 + $0x48] sm:$0xff]  ;;  %v60_v20 = vpack.c.bf16 %v54_v14, %v53_v13  ;;  %v2482_v23 = vld [vmem:[%s3868_s2 + $0x50] sm:$0xff] }
  0x17   :  { %2700 = vmatpush3.bf16.msra.mxu1 %v120_v9  ;;  %2693 = vmatprep.subr.bf16.mxu0 %v3190_v0  ;;  %v2487_v18 = vld [vmem:[%s3868_s2 + $0x60] sm:$0xff]  ;;  %v2488_v19 = vld [vmem:[%s3868_s2 + $0x68] sm:$0xff]  ;;  %v176_v21 = vpack.c.bf16 %v2481_v17, %v2480_v16  ;;  %v2483_v24 = vld [vmem:[%s3868_s2 + $0x58] sm:$0xff] }
  0x18   :  { %2701 = vmatprep.subr.bf16.mxu1 %v3190_v0  ;;  %v232_v22 = vpack.c.bf16 %v2488_v19, %v2487_v18  ;;  %v2489_v25 = vld [vmem:[%s3868_s2 + $0x70] sm:$0xff]  ;;  %v2490_v26 = vld [vmem:[%s3868_s2 + $0x78] sm:$0xff]  ;;  %v177_v27 = vpack.c.bf16 %v2483_v24, %v2482_v23  ;;  %v3336_v28 = vld [vmem:[%s3867_s1] sm:$0x3] }
  0x19   :  { %v233_v29 = vpack.c.bf16 %v2490_v26, %v2489_v25  ;;  %v283_v30 = vld [vmem:[%s3869_s3] sm:$0xff]  ;;  %v284_v31 = vld [vmem:[%s3869_s3 + $0x8] sm:$0xff]  ;;  %vm501_vm2 = vcmp.gt.s32.totalorder %v3336_v28, 0  ;;  %vm716_vm3 = vcmp.gt.s32.totalorder %v3336_v28, 1  ;;  %v285_v38 = vld [vmem:[%s3869_s3 + $0x10] sm:$0xff]  ;;  %vm1367_vm4 = vcmp.gt.s32.totalorder %v3336_v28, 4 }
  0x1a   :  { %2694 = vmatpush3.bf16.msra.mxu0 %v62_v12  ;;  %v2495_v32 = vld [vmem:[%s3869_s3 + $0x20] sm:$0xff]  ;;  %v2496_v33 = vld [vmem:[%s3869_s3 + $0x28] sm:$0xff]  ;;  %v502_v34 = vsel %vm501_vm2, 1, %v3192_v1  ;;  %v3359_v35 = vpack.c.bf16 %v284_v31, %v283_v30  ;;  %v717_v36 = vsel %vm716_vm3, 1, %v3192_v1  ;;  %v286_v39 = vld [vmem:[%s3869_s3 + $0x18] sm:$0xff]  ;;  %v1368_v43 = vsel %vm1367_vm4, 1, %v3192_v1 }
  0x1b   :  { %2702 = vmatpush3.bf16.msra.mxu1 %v121_v15  ;;  %2707 = vmatprep.subr.bf16.mxu0 %v3190_v0  ;;  %v3363_v37 = vpack.c.bf16 %v2496_v33, %v2495_v32  ;;  %v2497_v40 = vld [vmem:[%s3869_s3 + $0x30] sm:$0xff]  ;;  %v2498_v41 = vld [vmem:[%s3869_s3 + $0x38] sm:$0xff]  ;;  %v3382_v42 = vpack.c.bf16 %v286_v39, %v285_v38  ;;  %v2500_v45 = vld [vmem:[%s3869_s3 + $0x40] sm:$0xff]  ;;  %vm1805_vm5 = vcmp.gt.s32.totalorder %v3336_v28, 6  ;;  %vm938_vm7 = vcmp.gt.s32.totalorder %v3336_v28, 2 }
  0x1c   :  { %2715 = vmatprep.subr.bf16.mxu1 %v3190_v0  ;;  %504 = vperm.xlu0 %3029, %v502_v34   ;;  %v3387_v44 = vpack.c.bf16 %v2498_v41, %v2497_v40  ;;  %v2501_v46 = vld [vmem:[%s3869_s3 + $0x48] sm:$0xff]  ;;  %v2504_v47 = vld [vmem:[%s3869_s3 + $0x60] sm:$0xff]  ;;  %v1806_v50 = vsel %vm1805_vm5, 1, %v3192_v1  ;;  %v2502_v52 = vld [vmem:[%s3869_s3 + $0x50] sm:$0xff]  ;;  %vm1160_vm8 = vcmp.gt.s32.totalorder %v3336_v28, 3  ;;  %vm1583_vm9 = vcmp.gt.s32.totalorder %v3336_v28, 5 }
  0x1d   :  { %2696 = vmatmul.mubr.msk.bf16.vlgmr.msra.gmra.mrb[0].mxu0 %vm70_vm1, %v60_v20  ;;  %v2505_v48 = vld [vmem:[%s3869_s3 + $0x68] sm:$0xff]  ;;  %v3408_v49 = vpack.c.bf16 %v2501_v46, %v2500_v45  ;;  %v2503_v53 = vld [vmem:[%s3869_s3 + $0x58] sm:$0xff]  ;;  %v2506_v54 = vld [vmem:[%s3869_s3 + $0x70] sm:$0xff]  ;;  %vm2027_vm10 = vcmp.gt.s32.totalorder %v3336_v28, 7  ;;  %vm2059_vm2 = vcmask 1045504  }
  0x1e   :  { %2704 = vmatmul.mubr.msk.bf16.vlgmr.msra.gmra.mrb[0].mxu1 %vm70_vm1, %v60_v20  ;;  %2708 = vmatpush3.bf16.msra.mxu0 %v176_v21  ;;  %v3413_v51 = vpack.c.bf16 %v2505_v48, %v2504_v47  ;;  %v2507_v55 = vld [vmem:[%s3869_s3 + $0x78] sm:$0xff]  ;;  %v3431_v56 = vpack.c.bf16 %v2503_v53, %v2502_v52  ;;  %v2471_v61 = vld [vmem:[%s3870_s4] ss:$0 sm:$0xff]  ;;  %v2478_v2 = vld [vmem:[%s3870_s4 + $0x1] ss:$0 sm:$0xff] }
  0x1f   :  { %2716 = vmatpush3.bf16.msra.mxu1 %v232_v22  ;;  %2709 = vmatprep.subr.bf16.mxu0 %v3190_v0  ;;  %v3435_v57 = vpack.c.bf16 %v2507_v55, %v2506_v54  ;;  %v2485_v11 = vld [vmem:[%s3870_s4 + $0x2] ss:$0 sm:$0xff]  ;;  %v2492_v14 = vld [vmem:[%s3870_s4 + $0x3] ss:$0 sm:$0xff] }
  0x20   :  { %2717 = vmatprep.subr.bf16.mxu1 %v3190_v0  ;;  %2711 = vmatprep.mubr.msk.bf16.mxu0 %vm3191_vm0, %v3190_v0 }
  0x21   :  { %2719 = vmatprep.mubr.msk.bf16.mxu1 %vm3191_vm0, %v3190_v0  ;;  %719 = vperm.xlu0 %3029, %v717_v36  }
  0x22   :  { %2710 = vmatpush3.bf16.msra.mxu0 %v177_v27 }
  0x23   :  { %2718 = vmatpush3.bf16.msra.mxu1 %v233_v29  ;;  %2723 = vmatprep.subr.bf16.mxu0 %v3190_v0 }
  0x24   :  { %2731 = vmatprep.subr.bf16.mxu1 %v3190_v0 }
  0x25   :  { %2712 = vmatmul.mubr.msk.bf16.vlgmr.msra.gmra.mrb[4].mxu0 %vm70_vm1, %v60_v20  ;;  %1370 = vperm.xlu0 %3029, %v1368_v43  }
  0x26   :  { %2720 = vmatmul.mubr.msk.bf16.vlgmr.msra.gmra.mrb[4].mxu1 %vm70_vm1, %v60_v20  ;;  %2724 = vmatpush3.bf16.msra.mxu0 %v3359_v35 }
  0x27   :  { %2732 = vmatpush3.bf16.msra.mxu1 %v3363_v37  ;;  %2725 = vmatprep.subr.bf16.mxu0 %v3190_v0 }
  0x28   :  { %2733 = vmatprep.subr.bf16.mxu1 %v3190_v0  ;;  %2727 = vmatprep.mubr.msk.bf16.mxu0 %vm3191_vm0, %v3190_v0 }
  0x29   :  { %2735 = vmatprep.mubr.msk.bf16.mxu1 %vm3191_vm0, %v3190_v0  ;;  %1808 = vperm.xlu0 %3029, %v1806_v50  }
  0x2a   :  { %2726 = vmatpush3.bf16.msra.mxu0 %v3382_v42 }
  0x2b   :  { %2734 = vmatpush3.bf16.msra.mxu1 %v3387_v44  ;;  %2739 = vmatprep.subr.bf16.mxu0 %v3190_v0 }
  0x2c   :  { %2747 = vmatprep.subr.bf16.mxu1 %v3190_v0 }
  0x2d   :  { %2728 = vmatmul.mubr.bf16.vlgmr.msra.gmra.mrb[8].mxu0 %v3192_v1 }
  0x2e   :  { %2736 = vmatmul.mubr.bf16.vlgmr.msra.gmra.mrb[8].mxu1 %v3192_v1  ;;  %2740 = vmatpush3.bf16.msra.mxu0 %v3408_v49 }
  0x2f   :  { %2748 = vmatpush3.bf16.msra.mxu1 %v3413_v51  ;;  %2741 = vmatprep.subr.bf16.mxu0 %v3190_v0 }
  0x30   :  { %2749 = vmatprep.subr.bf16.mxu1 %v3190_v0  ;;  %2743 = vmatprep.mubr.msk.bf16.mxu0 %vm3191_vm0, %v3190_v0 }
  0x31   :  { %2751 = vmatprep.mubr.msk.bf16.mxu1 %vm3191_vm0, %v3190_v0 }
  0x32   :  { %2742 = vmatpush3.bf16.msra.mxu0 %v3431_v56 }
  0x33   :  { %2750 = vmatpush3.bf16.msra.mxu1 %v3435_v57  ;;  %2755 = vmatprep.subr.bf16.mxu0 %v3190_v0 }
  0x34   :  { %2763 = vmatprep.subr.bf16.mxu1 %v3190_v0 }
  0x35   :  { %2744 = vmatmul.mubr.bf16.vlgmr.msra.gmra.mrb[12].mxu0 %v3192_v1 }
  0x36   :  { %2752 = vmatmul.mubr.bf16.vlgmr.msra.gmra.mrb[12].mxu1 %v3192_v1  ;;  %2756 = vmatpush3.bf16.msra.mxu0 %v3359_v35 }
  0x37   :  { %2764 = vmatpush3.bf16.msra.mxu1 %v3363_v37  ;;  %2757 = vmatprep.subr.bf16.mxu0 %v3190_v0 }
  0x38   :  { %2765 = vmatprep.subr.bf16.mxu1 %v3190_v0  ;;  %2759 = vmatprep.mubr.msk.bf16.mxu0 %vm3191_vm0, %v3190_v0 }
  0x39   :  { %2767 = vmatprep.mubr.msk.bf16.mxu1 %vm3191_vm0, %v3190_v0 }
  0x3a   :  { %2758 = vmatpush3.bf16.msra.mxu0 %v3382_v42 }
  0x3b   :  { %2766 = vmatpush3.bf16.msra.mxu1 %v3387_v44  ;;  %2771 = vmatprep.subr.bf16.mxu0 %v3190_v0 }
  0x3c   :  { %2779 = vmatprep.subr.bf16.mxu1 %v3190_v0 }
  0xf0   :  { %v108_v58 = vpop.f32.mrb[0].mxu0 }
  0xf1   :  { %v164_v59 = vpop.f32.mrb[0].mxu1  ;;  %v2697_v60 = vpop.f32.mrb[1].mxu0  ;;  %v3480_v20 = vadd.f32 %v2471_v61, %v108_v58 }
  0xf2   :  { %v2705_v62 = vpop.f32.mrb[1].mxu1  ;;  %v111_v63 = vpop.f32.mrb[2].mxu0  ;;  %v3482_v21 = vadd.f32 %v2478_v2, %v164_v59 }
  0xf3   :  { %v3466_v3 = vadd.f32 %v2471_v61, %v111_v63  ;;  %v167_v4 = vpop.f32.mrb[2].mxu1  ;;  %v2698_v5 = vpop.f32.mrb[3].mxu0 }
  0xf4   :  { %v3468_v6 = vadd.f32 %v2478_v2, %v167_v4  ;;  %v2706_v7 = vpop.f32.mrb[3].mxu1  ;;  %v505_v63 = vpop.permute.xlu0 %504 }
  0xf5   :  { %vm506_vm6 = vcmp.eq.s32.totalorder %v505_v63, 1 }
  0xf8   :  { %v220_v8 = vpop.f32.mrb[4].mxu0 }
  0xf9   :  { %v276_v9 = vpop.f32.mrb[4].mxu1  ;;  %v2713_v10 = vpop.f32.mrb[5].mxu0  ;;  %v3489_v46 = vadd.f32 %v2485_v11, %v220_v8 }
  0xfa   :  { %v2721_v12 = vpop.f32.mrb[5].mxu1  ;;  %v223_v13 = vpop.f32.mrb[6].mxu0  ;;  %v3486_v36 = vadd.f32 %v2492_v14, %v276_v9 }
  0xfb   :  { %v3476_v15 = vadd.f32 %v2485_v11, %v223_v13  ;;  %v279_v16 = vpop.f32.mrb[6].mxu1  ;;  %v2714_v17 = vpop.f32.mrb[7].mxu0 }
  0xfc   :  { %v3478_v18 = vadd.f32 %v2492_v14, %v279_v16  ;;  %v2722_v19 = vpop.f32.mrb[7].mxu1  ;;  %v939_v16 = vsel %vm938_vm7, 1, %v3192_v1  ;;  %v1161_v17 = vsel %vm1160_vm8, 1, %v3192_v1  ;;  %vm2143_vm7 = vcmask 1046528  }
  0xfd   :  { %941 = vperm.xlu1 %3030, %v939_v16   ;;  %v1584_v19 = vsel %vm1583_vm9, 1, %v3192_v1  ;;  %vm2294_vm8 = vcmask 1044480  }
 0x100   :  { %v326_v22 = vpop.f32.mrb[8].mxu0 }
 0x101   :  { %v332_v23 = vadd.f32 %v326_v22, %v3480_v20  ;;  %v380_v24 = vpop.f32.mrb[8].mxu1  ;;  %v2729_v25 = vpop.f32.mrb[9].mxu0  ;;  %1163 = vperm.xlu1 %3030, %v1161_v17   ;;  %v2028_v22 = vsel %vm2027_vm10, 1, %v3192_v1 }
 0x102   :  { %v386_v26 = vadd.f32 %v380_v24, %v3482_v21  ;;  %v2737_v27 = vpop.f32.mrb[9].mxu1  ;;  %v329_v29 = vpop.f32.mrb[10].mxu0 }
 0x103   :  { %v2494_v30 = vmul.f32 -1.442695, %v332_v23  ;;  %v383_v31 = vpop.f32.mrb[10].mxu1  ;;  %v2730_v32 = vpop.f32.mrb[11].mxu0 }
 0x104   :  { %v2499_v33 = vmul.f32 -1.442695, %v386_v26  ;;  %v2738_v34 = vpop.f32.mrb[11].mxu1 }
 0x105   :  { %3031 = vpow2.f32 %v2494_v30  ;;  %1586 = vperm.xlu1 %3030, %v1584_v19  }
 0x106   :  { %3033 = vpow2.f32 %v2499_v33 }
 0x108   :  { %v434_v38 = vpop.f32.mrb[12].mxu0 }
 0x109   :  { %v483_v39 = vpop.f32.mrb[12].mxu1  ;;  %v2745_v40 = vpop.f32.mrb[13].mxu0  ;;  %v440_v53 = vadd.f32 %v434_v38, %v3489_v46  ;;  %2030 = vperm.xlu1 %3030, %v2028_v22  }
 0x10a   :  { %v489_v41 = vadd.f32 %v483_v39, %v3486_v36  ;;  %v2753_v43 = vpop.f32.mrb[13].mxu1  ;;  %v437_v45 = vpop.f32.mrb[14].mxu0 }
 0x10b   :  { %v486_v47 = vpop.f32.mrb[14].mxu1  ;;  %v2746_v48 = vpop.f32.mrb[15].mxu0 }
 0x10c   :  { %v2508_v50 = vmul.f32 -1.442695, %v489_v41  ;;  %v2754_v52 = vpop.f32.mrb[15].mxu1 }
 0x10e   :  { %3035 = vpow2.f32 %v2508_v50 }
 0x10f   :  { %v3032_v54 = vpop.eup %3031  ;;  %3037 = vtanh.f32 %v440_v53 }
 0x110   :  { %v3034_v55 = vpop.eup %3033  ;;  %v336_v58 = vadd.f32 1.0, %v3032_v54 }
 0x111   :  { %v390_v59 = vadd.f32 1.0, %v3034_v55 }
 0x112   :  { %3039 = vrcp.f32 %v336_v58 }
 0x113   :  { %3041 = vrcp.f32 %v390_v59 }
 0x118   :  { %v3036_v60 = vpop.eup %3035 }
 0x119   :  { %v3038_v61 = vpop.eup %3037  ;;  %v493_v4 = vadd.f32 1.0, %v3036_v60 }
 0x11b   :  { %3043 = vrcp.f32 %v493_v4 }
 0x11c   :  { %v3040_v62 = vpop.eup %3039 }
 0x11d   :  { %v3042_v2 = vpop.eup %3041  ;;  %v497_v5 = vmul.f32 %v3040_v62, %v3038_v61 }
 0x11e   :  { %v496_v7 = vmul.f32 0.0, %v3042_v2 }
 0x120   :  { %v498_v8 = vadd.f32 %v497_v5, %v496_v7 }
 0x122   :  { %3045 = vtanh.f32 %v498_v8  ;;  %v3492_v9 = vsel %vm506_vm6, %v498_v8, 0.0 }
 0x123   :  { %v709_v5 = vrot.slane %v3492_v9, 6 }
 0x125   :  { %v3044_v10 = vpop.eup %3043 }
 0x12c   :  { %v3046_v11 = vpop.eup %3045 }
 0x12d   :  { %v500_v12 = vmul.f32 %v3046_v11, %v3044_v10 }
 0x12f   :  { %v3494_v13 = vsel %vm506_vm6, %v500_v12, 0.0 }
 0x130   :  { %v509_v14 = vpack.c.bf16 %v3494_v13, %v3494_v13 }
 0x132   :  { %2760 = vmatmul.mubr.msk.bf16.vlgmr.msra.gmra.mrb[16].mxu0 %vm70_vm1, %v509_v14  ;;  %2768 = vmatmul.mubr.msk.bf16.vlgmr.msra.gmra.mrb[16].mxu1 %vm70_vm1, %v509_v14 }
 0x133   :  { %2772 = vmatpush3.bf16.msra.mxu0 %v3408_v49  ;;  %2780 = vmatpush3.bf16.msra.mxu1 %v3413_v51 }
 0x134   :  { %2773 = vmatprep.subr.bf16.mxu0 %v3190_v0  ;;  %2781 = vmatprep.subr.bf16.mxu1 %v3190_v0 }
 0x135   :  { %2775 = vmatprep.mubr.msk.bf16.mxu0 %vm3191_vm0, %v3190_v0  ;;  %2783 = vmatprep.mubr.msk.bf16.mxu1 %vm3191_vm0, %v3190_v0 }
 0x137   :  { %2774 = vmatpush3.bf16.msra.mxu0 %v3431_v56  ;;  %2782 = vmatpush3.bf16.msra.mxu1 %v3435_v57 }
 0x138   :  { %2787 = vmatprep.subr.bf16.mxu0 %v3190_v0  ;;  %2795 = vmatprep.subr.bf16.mxu1 %v3190_v0 }
 0x13a   :  { %2776 = vmatmul.mubr.msk.bf16.vlgmr.msra.gmra.mrb[20].mxu0 %vm70_vm1, %v509_v14  ;;  %2784 = vmatmul.mubr.msk.bf16.vlgmr.msra.gmra.mrb[20].mxu1 %vm70_vm1, %v509_v14  ;;  %v720_v14 = vpop.permute.xlu0 %719 }
 0x13b   :  { %2788 = vmatpush3.bf16.msra.mxu0 %v3359_v35  ;;  %2796 = vmatpush3.bf16.msra.mxu1 %v3363_v37  ;;  %vm721_vm11 = vcmp.eq.s32.totalorder %v720_v14, 1 }
 0x13c   :  { %2789 = vmatprep.subr.bf16.mxu0 %v3190_v0  ;;  %2797 = vmatprep.subr.bf16.mxu1 %v3190_v0 }
 0x13d   :  { %2791 = vmatprep.mubr.msk.bf16.mxu0 %vm3191_vm0, %v3190_v0  ;;  %2799 = vmatprep.mubr.msk.bf16.mxu1 %vm3191_vm0, %v3190_v0 }
 0x13f   :  { %2790 = vmatpush3.bf16.msra.mxu0 %v3382_v42  ;;  %2798 = vmatpush3.bf16.msra.mxu1 %v3387_v44 }
 0x140   :  { %2803 = vmatprep.subr.bf16.mxu0 %v3190_v0  ;;  %2811 = vmatprep.subr.bf16.mxu1 %v3190_v0 }
 0x205   :  { %v547_v23 = vpop.f32.mrb[16].mxu0  ;;  %v597_v24 = vpop.f32.mrb[16].mxu1 }
 0x206   :  { %v554_v25 = vrot.slane %v547_v23, 6  ;;  %v604_v26 = vrot.slane %v597_v24, 6  ;;  %v2761_v27 = vpop.f32.mrb[17].mxu0  ;;  %v2769_v29 = vpop.f32.mrb[17].mxu1 }
 0x207   :  { %v550_v30 = vpop.f32.mrb[18].mxu0  ;;  %v600_v31 = vpop.f32.mrb[18].mxu1 }
 0x208   :  { %v556_v32 = vadd.f32 %v554_v25, %v3480_v20  ;;  %v606_v33 = vadd.f32 %v604_v26, %v3482_v21  ;;  %v2762_v34 = vpop.f32.mrb[19].mxu0  ;;  %v2770_v38 = vpop.f32.mrb[19].mxu1 }
 0x20a   :  { %v2510_v39 = vmul.f32 -1.442695, %v556_v32  ;;  %v2512_v28 = vmul.f32 -1.442695, %v606_v33 }
 0x20c   :  { %3047 = vpow2.f32 %v2510_v39 }
 0x20d   :  { %3049 = vpow2.f32 %v2512_v28  ;;  %v647_v1 = vpop.f32.mrb[20].mxu0  ;;  %v692_v40 = vpop.f32.mrb[20].mxu1 }
 0x20e   :  { %v699_v41 = vrot.slane %v692_v40, 6  ;;  %v2777_v43 = vpop.f32.mrb[21].mxu0  ;;  %v2785_v45 = vpop.f32.mrb[21].mxu1  ;;  %v654_v50 = vrot.slane %v647_v1, 6 }
 0x20f   :  { %v650_v47 = vpop.f32.mrb[22].mxu0  ;;  %v695_v48 = vpop.f32.mrb[22].mxu1 }
 0x210   :  { %v701_v52 = vadd.f32 %v699_v41, %v3486_v36  ;;  %v2778_v53 = vpop.f32.mrb[23].mxu0  ;;  %v2786_v54 = vpop.f32.mrb[23].mxu1  ;;  %v656_v58 = vadd.f32 %v654_v50, %v3489_v46 }
 0x212   :  { %v2515_v55 = vmul.f32 -1.442695, %v701_v52 }
 0x214   :  { %3051 = vpow2.f32 %v2515_v55 }
 0x215   :  { %3053 = vtanh.f32 %v656_v58 }
 0x216   :  { %v3048_v59 = vpop.eup %3047 }
 0x217   :  { %v3050_v60 = vpop.eup %3049  ;;  %v560_v61 = vadd.f32 1.0, %v3048_v59 }
 0x218   :  { %v610_v62 = vadd.f32 1.0, %v3050_v60 }
 0x219   :  { %3055 = vrcp.f32 %v560_v61 }
 0x21a   :  { %3057 = vrcp.f32 %v610_v62 }
 0x21e   :  { %v3052_v63 = vpop.eup %3051 }
 0x21f   :  { %v3054_v2 = vpop.eup %3053  ;;  %v705_v10 = vadd.f32 1.0, %v3052_v63 }
 0x221   :  { %3059 = vrcp.f32 %v705_v10 }
 0x223   :  { %v3056_v4 = vpop.eup %3055 }
 0x224   :  { %v3058_v7 = vpop.eup %3057  ;;  %v712_v8 = vmul.f32 %v3056_v4, %v3054_v2 }
 0x225   :  { %v711_v11 = vmul.f32 %v3058_v7, %v709_v5 }
 0x227   :  { %v713_v12 = vadd.f32 %v712_v8, %v711_v11 }
 0x229   :  { %3061 = vtanh.f32 %v713_v12  ;;  %v723_v16 = vrot.slane %v713_v12, 2 }
 0x22b   :  { %v3540_v17 = vsel %vm721_vm11, %v723_v16, %v3492_v9  ;;  %v3060_v19 = vpop.eup %3059 }
 0x22c   :  { %v931_v11 = vrot.slane %v3540_v17, 4 }
 0x233   :  { %v3062_v22 = vpop.eup %3061 }
 0x234   :  { %v715_v23 = vmul.f32 %v3062_v22, %v3060_v19  ;;  %v942_v19 = vpop.permute.xlu1 %941 }
 0x235   :  { %vm943_vm12 = vcmp.eq.s32.totalorder %v942_v19, 1 }
 0x236   :  { %v727_v24 = vrot.slane %v715_v23, 2 }
 0x238   :  { %v3543_v25 = vsel %vm721_vm11, %v727_v24, %v3494_v13  ;;  %v3545_v26 = vsel %vm721_vm11, %v727_v24, 0.0 }
 0x239   :  { %v731_v27 = vpack.c.bf16 %v3543_v25, %v3543_v25 }
 0x23b   :  { %2792 = vmatmul.mubr.msk.bf16.vlgmr.msra.gmra.mrb[24].mxu0 %vm70_vm1, %v731_v27  ;;  %2800 = vmatmul.mubr.msk.bf16.vlgmr.msra.gmra.mrb[24].mxu1 %vm70_vm1, %v731_v27 }
 0x23c   :  { %2804 = vmatpush3.bf16.msra.mxu0 %v3408_v49  ;;  %2812 = vmatpush3.bf16.msra.mxu1 %v3413_v51 }
 0x23d   :  { %2805 = vmatprep.subr.bf16.mxu0 %v3190_v0  ;;  %2813 = vmatprep.subr.bf16.mxu1 %v3190_v0 }
 0x23e   :  { %2807 = vmatprep.mubr.msk.bf16.mxu0 %vm3191_vm0, %v3190_v0  ;;  %2815 = vmatprep.mubr.msk.bf16.mxu1 %vm3191_vm0, %v3190_v0 }
 0x240   :  { %2806 = vmatpush3.bf16.msra.mxu0 %v3431_v56  ;;  %2814 = vmatpush3.bf16.msra.mxu1 %v3435_v57 }
 0x241   :  { %2819 = vmatprep.subr.bf16.mxu0 %v3190_v0  ;;  %2827 = vmatprep.subr.bf16.mxu1 %v3190_v0 }
 0x243   :  { %2808 = vmatmul.mubr.msk.bf16.vlgmr.msra.gmra.mrb[28].mxu0 %vm70_vm1, %v731_v27  ;;  %2816 = vmatmul.mubr.msk.bf16.vlgmr.msra.gmra.mrb[28].mxu1 %vm70_vm1, %v731_v27 }
 0x244   :  { %2820 = vmatpush3.bf16.msra.mxu0 %v3359_v35  ;;  %2828 = vmatpush3.bf16.msra.mxu1 %v3363_v37 }
 0x245   :  { %2821 = vmatprep.subr.bf16.mxu0 %v3190_v0  ;;  %2829 = vmatprep.subr.bf16.mxu1 %v3190_v0 }
 0x246   :  { %2823 = vmatprep.mubr.msk.bf16.mxu0 %vm3191_vm0, %v3190_v0  ;;  %2831 = vmatprep.mubr.msk.bf16.mxu1 %vm3191_vm0, %v3190_v0 }
 0x248   :  { %2822 = vmatpush3.bf16.msra.mxu0 %v3382_v42  ;;  %2830 = vmatpush3.bf16.msra.mxu1 %v3387_v44 }
 0x249   :  { %2835 = vmatprep.subr.bf16.mxu0 %v3190_v0  ;;  %2843 = vmatprep.subr.bf16.mxu1 %v3190_v0 }
 0x30e   :  { %v769_v9 = vpop.f32.mrb[24].mxu0  ;;  %v819_v29 = vpop.f32.mrb[24].mxu1 }
 0x30f   :  { %v776_v30 = vrot.slane %v769_v9, 4  ;;  %v826_v31 = vrot.slane %v819_v29, 4  ;;  %v2793_v32 = vpop.f32.mrb[25].mxu0  ;;  %v2801_v33 = vpop.f32.mrb[25].mxu1 }
 0x310   :  { %v772_v34 = vpop.f32.mrb[26].mxu0  ;;  %v822_v38 = vpop.f32.mrb[26].mxu1  ;;  %v2038_v32 = vrot.slane %v3545_v26, 6 }
 0x311   :  { %v778_v39 = vadd.f32 %v776_v30, %v3480_v20  ;;  %v828_v28 = vadd.f32 %v826_v31, %v3482_v21  ;;  %v2794_v1 = vpop.f32.mrb[27].mxu0  ;;  %v2802_v40 = vpop.f32.mrb[27].mxu1 }
 0x313   :  { %v2517_v41 = vmul.f32 -1.442695, %v778_v39  ;;  %v2519_v43 = vmul.f32 -1.442695, %v828_v28 }
 0x315   :  { %3063 = vpow2.f32 %v2517_v41 }
 0x316   :  { %3065 = vpow2.f32 %v2519_v43  ;;  %v869_v45 = vpop.f32.mrb[28].mxu0  ;;  %v914_v47 = vpop.f32.mrb[28].mxu1 }
 0x317   :  { %v921_v48 = vrot.slane %v914_v47, 4  ;;  %v2809_v50 = vpop.f32.mrb[29].mxu0  ;;  %v2817_v52 = vpop.f32.mrb[29].mxu1  ;;  %v876_v55 = vrot.slane %v869_v45, 4 }
 0x318   :  { %v872_v53 = vpop.f32.mrb[30].mxu0  ;;  %v917_v54 = vpop.f32.mrb[30].mxu1 }
 0x319   :  { %v923_v58 = vadd.f32 %v921_v48, %v3486_v36  ;;  %v2810_v59 = vpop.f32.mrb[31].mxu0  ;;  %v2818_v60 = vpop.f32.mrb[31].mxu1  ;;  %v878_v62 = vadd.f32 %v876_v55, %v3489_v46 }
 0x31b   :  { %v2522_v61 = vmul.f32 -1.442695, %v923_v58 }
 0x31d   :  { %3067 = vpow2.f32 %v2522_v61 }
 0x31e   :  { %3069 = vtanh.f32 %v878_v62 }
 0x31f   :  { %v3064_v63 = vpop.eup %3063 }
 0x320   :  { %v3066_v2 = vpop.eup %3065  ;;  %v782_v4 = vadd.f32 1.0, %v3064_v63 }
 0x321   :  { %v832_v5 = vadd.f32 1.0, %v3066_v2 }
 0x322   :  { %3071 = vrcp.f32 %v782_v4 }
 0x323   :  { %3073 = vrcp.f32 %v832_v5 }
 0x327   :  { %v3068_v7 = vpop.eup %3067 }
 0x328   :  { %v3070_v8 = vpop.eup %3069  ;;  %v927_v14 = vadd.f32 1.0, %v3068_v7 }
 0x32a   :  { %3075 = vrcp.f32 %v927_v14 }
 0x32c   :  { %v3072_v10 = vpop.eup %3071 }
 0x32d   :  { %v3074_v12 = vpop.eup %3073  ;;  %v934_v16 = vmul.f32 %v3072_v10, %v3070_v8 }
 0x32e   :  { %v933_v22 = vmul.f32 %v3074_v12, %v931_v11 }
 0x330   :  { %v935_v23 = vadd.f32 %v934_v16, %v933_v22 }
 0x332   :  { %3077 = vtanh.f32 %v935_v23  ;;  %v945_v24 = vrot.slane %v935_v23, 4 }
 0x334   :  { %v3583_v27 = vsel %vm943_vm12, %v945_v24, %v3540_v17  ;;  %v3076_v9 = vpop.eup %3075  ;;  %v2056_v17 = vsel %vm2055_vm13, %v3494_v13, %v2038_v32 }
 0x335   :  { %v1153_v22 = vrot.slane %v3583_v27, 2 }
 0x33c   :  { %v3078_v29 = vpop.eup %3077 }
 0x33d   :  { %v937_v30 = vmul.f32 %v3078_v29, %v3076_v9 }
 0x33f   :  { %v949_v31 = vrot.slane %v937_v30, 4 }
 0x341   :  { %v3587_v33 = vsel %vm943_vm12, %v949_v31, %v3543_v25  ;;  %v952_v34 = vsel %vm943_vm12, %v949_v31, 0.0 }
 0x342   :  { %v953_v38 = vpack.c.bf16 %v3587_v33, %v3587_v33  ;;  %v2041_v39 = vrot.slane %v952_v34, 4 }
 0x344   :  { %v3594_v28 = vsel %vm2057_vm14, %v2056_v17, %v2041_v39  ;;  %2824 = vmatmul.mubr.msk.bf16.vlgmr.msra.gmra.mrb[32].mxu0 %vm70_vm1, %v953_v38  ;;  %2832 = vmatmul.mubr.msk.bf16.vlgmr.msra.gmra.mrb[32].mxu1 %vm70_vm1, %v953_v38 }
 0x345   :  { %2836 = vmatpush3.bf16.msra.mxu0 %v3408_v49  ;;  %2844 = vmatpush3.bf16.msra.mxu1 %v3413_v51 }
 0x346   :  { %2837 = vmatprep.subr.bf16.mxu0 %v3190_v0  ;;  %2845 = vmatprep.subr.bf16.mxu1 %v3190_v0 }
 0x347   :  { %2839 = vmatprep.mubr.msk.bf16.mxu0 %vm3191_vm0, %v3190_v0  ;;  %2847 = vmatprep.mubr.msk.bf16.mxu1 %vm3191_vm0, %v3190_v0 }
 0x349   :  { %2838 = vmatpush3.bf16.msra.mxu0 %v3431_v56  ;;  %2846 = vmatpush3.bf16.msra.mxu1 %v3435_v57 }
 0x34a   :  { %2851 = vmatprep.subr.bf16.mxu0 %v3190_v0  ;;  %2859 = vmatprep.subr.bf16.mxu1 %v3190_v0 }
 0x34c   :  { %2840 = vmatmul.mubr.msk.bf16.vlgmr.msra.gmra.mrb[36].mxu0 %vm70_vm1, %v953_v38  ;;  %2848 = vmatmul.mubr.msk.bf16.vlgmr.msra.gmra.mrb[36].mxu1 %vm70_vm1, %v953_v38 }
 0x34d   :  { %2852 = vmatpush3.bf16.msra.mxu0 %v3359_v35  ;;  %2860 = vmatpush3.bf16.msra.mxu1 %v3363_v37 }
 0x34e   :  { %2853 = vmatprep.subr.bf16.mxu0 %v3190_v0  ;;  %2861 = vmatprep.subr.bf16.mxu1 %v3190_v0 }
 0x34f   :  { %2855 = vmatprep.mubr.msk.bf16.mxu0 %vm3191_vm0, %v3190_v0  ;;  %2863 = vmatprep.mubr.msk.bf16.mxu1 %vm3191_vm0, %v3190_v0 }
 0x351   :  { %2854 = vmatpush3.bf16.msra.mxu0 %v3382_v42  ;;  %2862 = vmatpush3.bf16.msra.mxu1 %v3387_v44 }
 0x352   :  { %2867 = vmatprep.subr.bf16.mxu0 %v3190_v0  ;;  %2875 = vmatprep.subr.bf16.mxu1 %v3190_v0 }
 0x417   :  { %v991_v13 = vpop.f32.mrb[32].mxu0  ;;  %v1041_v25 = vpop.f32.mrb[32].mxu1 }
 0x418   :  { %v998_v26 = vrot.slane %v991_v13, 2  ;;  %v1048_v1 = vrot.slane %v1041_v25, 2  ;;  %v2825_v40 = vpop.f32.mrb[33].mxu0  ;;  %v2833_v41 = vpop.f32.mrb[33].mxu1 }
 0x419   :  { %v994_v43 = vpop.f32.mrb[34].mxu0  ;;  %v1044_v45 = vpop.f32.mrb[34].mxu1 }
 0x41a   :  { %v1000_v47 = vadd.f32 %v998_v26, %v3480_v20  ;;  %v1050_v48 = vadd.f32 %v1048_v1, %v3482_v21  ;;  %v2826_v50 = vpop.f32.mrb[35].mxu0  ;;  %v2834_v52 = vpop.f32.mrb[35].mxu1 }
 0x41c   :  { %v2524_v53 = vmul.f32 -1.442695, %v1000_v47  ;;  %v2526_v54 = vmul.f32 -1.442695, %v1050_v48 }
 0x41e   :  { %3079 = vpow2.f32 %v2524_v53 }
 0x41f   :  { %3081 = vpow2.f32 %v2526_v54  ;;  %v1091_v55 = vpop.f32.mrb[36].mxu0  ;;  %v1136_v58 = vpop.f32.mrb[36].mxu1 }
 0x420   :  { %v1143_v59 = vrot.slane %v1136_v58, 2  ;;  %v2841_v60 = vpop.f32.mrb[37].mxu0  ;;  %v2849_v61 = vpop.f32.mrb[37].mxu1  ;;  %v1098_v2 = vrot.slane %v1091_v55, 2 }
 0x421   :  { %v1094_v62 = vpop.f32.mrb[38].mxu0  ;;  %v1139_v63 = vpop.f32.mrb[38].mxu1 }
 0x422   :  { %v1145_v4 = vadd.f32 %v1143_v59, %v3486_v36  ;;  %v2842_v5 = vpop.f32.mrb[39].mxu0  ;;  %v2850_v20 = vpop.f32.mrb[39].mxu1  ;;  %v1100_v21 = vadd.f32 %v1098_v2, %v3489_v46 }
 0x423   :  { %v1164_v46 = vpop.permute.xlu1 %1163 }
 0x424   :  { %v2529_v7 = vmul.f32 -1.442695, %v1145_v4  ;;  %vm1165_vm15 = vcmp.eq.s32.totalorder %v1164_v46, 1 }
 0x426   :  { %3083 = vpow2.f32 %v2529_v7 }
 0x427   :  { %3085 = vtanh.f32 %v1100_v21 }
 0x428   :  { %v3080_v8 = vpop.eup %3079 }
 0x429   :  { %v3082_v10 = vpop.eup %3081  ;;  %v1004_v11 = vadd.f32 1.0, %v3080_v8 }
 0x42a   :  { %v1054_v12 = vadd.f32 1.0, %v3082_v10 }
 0x42b   :  { %3087 = vrcp.f32 %v1004_v11 }
 0x42c   :  { %3089 = vrcp.f32 %v1054_v12 }
 0x430   :  { %v3084_v14 = vpop.eup %3083 }
 0x431   :  { %v3086_v16 = vpop.eup %3085  ;;  %v1149_v24 = vadd.f32 1.0, %v3084_v14 }
 0x433   :  { %3091 = vrcp.f32 %v1149_v24 }
 0x435   :  { %v3088_v19 = vpop.eup %3087 }
 0x436   :  { %v3090_v23 = vpop.eup %3089  ;;  %v1156_v36 = vmul.f32 %v3088_v19, %v3086_v16 }
 0x437   :  { %v1155_v9 = vmul.f32 %v3090_v23, %v1153_v22  ;;  %v1371_v23 = vpop.permute.xlu0 %1370 }
 0x438   :  { %vm1372_vm3 = vcmp.eq.s32.totalorder %v1371_v23, 1 }
 0x439   :  { %v1157_v29 = vadd.f32 %v1156_v36, %v1155_v9 }
 0x43b   :  { %3093 = vtanh.f32 %v1157_v29  ;;  %v1167_v30 = vrot.slane %v1157_v29, 6 }
 0x43d   :  { %v3630_v31 = vsel %vm1165_vm15, %v1167_v30, %v3583_v27  ;;  %v3092_v32 = vpop.eup %3091 }
 0x445   :  { %v3094_v34 = vpop.eup %3093 }
 0x446   :  { %v1159_v38 = vmul.f32 %v3094_v34, %v3092_v32 }
 0x448   :  { %v1171_v39 = vrot.slane %v1159_v38, 6 }
 0x44a   :  { %v3633_v17 = vsel %vm1165_vm15, %v1171_v39, %v3587_v33  ;;  %v1174_v13 = vsel %vm1165_vm15, %v1171_v39, 0.0 }
 0x44b   :  { %v1175_v25 = vpack.c.bf16 %v3633_v17, %v3633_v17  ;;  %v2044_v26 = vrot.slane %v1174_v13, 2 }
 0x44d   :  { %2856 = vmatmul.mubr.msk.bf16.vlgmr.msra.gmra.mrb[40].mxu0 %vm70_vm1, %v1175_v25  ;;  %2864 = vmatmul.mubr.msk.bf16.vlgmr.msra.gmra.mrb[40].mxu1 %vm70_vm1, %v1175_v25  ;;  %v3641_v27 = vsel %vm2059_vm2, %v3594_v28, %v2044_v26 }
 0x44e   :  { %2868 = vmatpush3.bf16.msra.mxu0 %v3408_v49  ;;  %2876 = vmatpush3.bf16.msra.mxu1 %v3413_v51 }
 0x44f   :  { %2869 = vmatprep.subr.bf16.mxu0 %v3190_v0  ;;  %2877 = vmatprep.subr.bf16.mxu1 %v3190_v0 }
 0x450   :  { %2871 = vmatprep.mubr.msk.bf16.mxu0 %vm3191_vm0, %v3190_v0  ;;  %2879 = vmatprep.mubr.msk.bf16.mxu1 %vm3191_vm0, %v3190_v0 }
 0x452   :  { %2870 = vmatpush3.bf16.msra.mxu0 %v3431_v56  ;;  %2878 = vmatpush3.bf16.msra.mxu1 %v3435_v57 }
 0x453   :  { %2883 = vmatprep.subr.bf16.mxu0 %v3190_v0  ;;  %2891 = vmatprep.subr.bf16.mxu1 %v3190_v0 }
 0x455   :  { %2872 = vmatmul.mubr.msk.bf16.vlgmr.msra.gmra.mrb[44].mxu0 %vm70_vm1, %v1175_v25  ;;  %2880 = vmatmul.mubr.msk.bf16.vlgmr.msra.gmra.mrb[44].mxu1 %vm70_vm1, %v1175_v25 }
 0x456   :  { %2884 = vmatpush3.bf16.msra.mxu0 %v3359_v35  ;;  %2892 = vmatpush3.bf16.msra.mxu1 %v3363_v37 }
 0x457   :  { %2885 = vmatprep.subr.bf16.mxu0 %v3190_v0  ;;  %2893 = vmatprep.subr.bf16.mxu1 %v3190_v0 }
 0x458   :  { %2887 = vmatprep.mubr.msk.bf16.mxu0 %vm3191_vm0, %v3190_v0  ;;  %2895 = vmatprep.mubr.msk.bf16.mxu1 %vm3191_vm0, %v3190_v0 }
 0x45a   :  { %2886 = vmatpush3.bf16.msra.mxu0 %v3382_v42  ;;  %2894 = vmatpush3.bf16.msra.mxu1 %v3387_v44 }
 0x45b   :  { %2899 = vmatprep.subr.bf16.mxu0 %v3190_v0  ;;  %2907 = vmatprep.subr.bf16.mxu1 %v3190_v0 }
 0x520   :  { %v1213_v33 = vpop.f32.mrb[40].mxu0  ;;  %v1260_v28 = vpop.f32.mrb[40].mxu1 }
 0x521   :  { %v1219_v1 = vadd.f32 %v1213_v33, %v3466_v3  ;;  %v1266_v40 = vadd.f32 %v1260_v28, %v3468_v6  ;;  %v2857_v41 = vpop.f32.mrb[41].mxu0  ;;  %v2865_v43 = vpop.f32.mrb[41].mxu1 }
 0x522   :  { %v1216_v45 = vpop.f32.mrb[42].mxu0  ;;  %v1263_v47 = vpop.f32.mrb[42].mxu1 }
 0x523   :  { %v2531_v48 = vmul.f32 -1.442695, %v1219_v1  ;;  %v2533_v50 = vmul.f32 -1.442695, %v1266_v40  ;;  %v2858_v52 = vpop.f32.mrb[43].mxu0  ;;  %v2866_v53 = vpop.f32.mrb[43].mxu1 }
 0x525   :  { %3095 = vpow2.f32 %v2531_v48 }
 0x526   :  { %3097 = vpow2.f32 %v2533_v50 }
 0x528   :  { %v1307_v54 = vpop.f32.mrb[44].mxu0  ;;  %v1349_v55 = vpop.f32.mrb[44].mxu1 }
 0x529   :  { %v1355_v58 = vadd.f32 %v1349_v55, %v3478_v18  ;;  %v2873_v59 = vpop.f32.mrb[45].mxu0  ;;  %v2881_v60 = vpop.f32.mrb[45].mxu1  ;;  %v1313_v5 = vadd.f32 %v1307_v54, %v3476_v15 }
 0x52a   :  { %v1310_v61 = vpop.f32.mrb[46].mxu0  ;;  %v1352_v62 = vpop.f32.mrb[46].mxu1 }
 0x52b   :  { %v2874_v63 = vpop.f32.mrb[47].mxu0  ;;  %v2882_v2 = vpop.f32.mrb[47].mxu1  ;;  %v2536_v4 = vmul.f32 -1.442695, %v1355_v58 }
 0x52d   :  { %3099 = vpow2.f32 %v2536_v4 }
 0x52e   :  { %3101 = vtanh.f32 %v1313_v5 }
 0x52f   :  { %v3096_v20 = vpop.eup %3095 }
 0x530   :  { %v3098_v7 = vpop.eup %3097  ;;  %v1223_v21 = vadd.f32 1.0, %v3096_v20 }
 0x531   :  { %v1270_v8 = vadd.f32 1.0, %v3098_v7 }
 0x532   :  { %3103 = vrcp.f32 %v1223_v21 }
 0x533   :  { %3105 = vrcp.f32 %v1270_v8 }
 0x537   :  { %v3100_v10 = vpop.eup %3099 }
 0x538   :  { %v3102_v11 = vpop.eup %3101  ;;  %v1359_v19 = vadd.f32 1.0, %v3100_v10 }
 0x53a   :  { %3107 = vrcp.f32 %v1359_v19 }
 0x53c   :  { %v3104_v12 = vpop.eup %3103 }
 0x53d   :  { %v3106_v14 = vpop.eup %3105  ;;  %v1363_v16 = vmul.f32 %v3104_v12, %v3102_v11 }
 0x53e   :  { %v1362_v22 = vmul.f32 %v3106_v14, %v3630_v31 }
 0x540   :  { %v1364_v36 = vadd.f32 %v1363_v16, %v1362_v22  ;;  %v1587_v22 = vpop.permute.xlu1 %1586 }
 0x541   :  { %vm1588_vm4 = vcmp.eq.s32.totalorder %v1587_v22, 1 }
 0x542   :  { %3109 = vtanh.f32 %v1364_v36  ;;  %v3675_v24 = vsel %vm1372_vm3, %v1364_v36, %v3630_v31 }
 0x543   :  { %v1576_v10 = vrot.slane %v3675_v24, 6 }
 0x544   :  { %v3108_v9 = vpop.eup %3107 }
 0x54c   :  { %v3110_v29 = vpop.eup %3109 }
 0x54d   :  { %v1366_v46 = vmul.f32 %v3110_v29, %v3108_v9 }
 0x54f   :  { %v3677_v30 = vsel %vm1372_vm3, %v1366_v46, 0.0  ;;  %v3680_v32 = vsel %vm1372_vm3, %v1366_v46, %v3633_v17 }
 0x550   :  { %v1376_v34 = vpack.c.bf16 %v3680_v32, %v3680_v32 }
 0x552   :  { %2888 = vmatmul.mubr.msk.bf16.vlgmr.msra.gmra.mrb[48].mxu0 %vm70_vm1, %v1376_v34  ;;  %2896 = vmatmul.mubr.msk.bf16.vlgmr.msra.gmra.mrb[48].mxu1 %vm70_vm1, %v1376_v34 }
 0x553   :  { %2900 = vmatpush3.bf16.msra.mxu0 %v3408_v49  ;;  %2908 = vmatpush3.bf16.msra.mxu1 %v3413_v51 }
 0x554   :  { %2901 = vmatprep.subr.bf16.mxu0 %v3190_v0  ;;  %2909 = vmatprep.subr.bf16.mxu1 %v3190_v0 }
 0x555   :  { %2903 = vmatprep.mubr.msk.bf16.mxu0 %vm3191_vm0, %v3190_v0  ;;  %2911 = vmatprep.mubr.msk.bf16.mxu1 %vm3191_vm0, %v3190_v0 }
 0x557   :  { %2902 = vmatpush3.bf16.msra.mxu0 %v3431_v56  ;;  %2910 = vmatpush3.bf16.msra.mxu1 %v3435_v57 }
 0x558   :  { %2915 = vmatprep.subr.bf16.mxu0 %v3190_v0  ;;  %2923 = vmatprep.subr.bf16.mxu1 %v3190_v0 }
 0x55a   :  { %2904 = vmatmul.mubr.msk.bf16.vlgmr.msra.gmra.mrb[52].mxu0 %vm70_vm1, %v1376_v34  ;;  %2912 = vmatmul.mubr.msk.bf16.vlgmr.msra.gmra.mrb[52].mxu1 %vm70_vm1, %v1376_v34 }
 0x55b   :  { %2916 = vmatpush3.bf16.msra.mxu0 %v3359_v35  ;;  %2924 = vmatpush3.bf16.msra.mxu1 %v3363_v37 }
 0x55c   :  { %2917 = vmatprep.subr.bf16.mxu0 %v3190_v0  ;;  %2925 = vmatprep.subr.bf16.mxu1 %v3190_v0 }
 0x55d   :  { %2919 = vmatprep.mubr.msk.bf16.mxu0 %vm3191_vm0, %v3190_v0  ;;  %2927 = vmatprep.mubr.msk.bf16.mxu1 %vm3191_vm0, %v3190_v0 }
 0x55f   :  { %2918 = vmatpush3.bf16.msra.mxu0 %v3382_v42  ;;  %2926 = vmatpush3.bf16.msra.mxu1 %v3387_v44 }
 0x560   :  { %2931 = vmatprep.subr.bf16.mxu0 %v3190_v0  ;;  %2939 = vmatprep.subr.bf16.mxu1 %v3190_v0 }
 0x625   :  { %v1414_v31 = vpop.f32.mrb[48].mxu0  ;;  %v1464_v38 = vpop.f32.mrb[48].mxu1 }
 0x626   :  { %v1421_v39 = vrot.slane %v1414_v31, 6  ;;  %v1471_v17 = vrot.slane %v1464_v38, 6  ;;  %v2889_v13 = vpop.f32.mrb[49].mxu0  ;;  %v2897_v25 = vpop.f32.mrb[49].mxu1 }
 0x627   :  { %v1417_v26 = vpop.f32.mrb[50].mxu0  ;;  %v1467_v33 = vpop.f32.mrb[50].mxu1 }
 0x628   :  { %v1423_v28 = vadd.f32 %v1421_v39, %v3466_v3  ;;  %v1473_v1 = vadd.f32 %v1471_v17, %v3468_v6  ;;  %v2890_v40 = vpop.f32.mrb[51].mxu0  ;;  %v2898_v41 = vpop.f32.mrb[51].mxu1 }
 0x62a   :  { %v2538_v43 = vmul.f32 -1.442695, %v1423_v28  ;;  %v2540_v45 = vmul.f32 -1.442695, %v1473_v1 }
 0x62c   :  { %3111 = vpow2.f32 %v2538_v43 }
 0x62d   :  { %3113 = vpow2.f32 %v2540_v45  ;;  %v1514_v47 = vpop.f32.mrb[52].mxu0  ;;  %v1559_v48 = vpop.f32.mrb[52].mxu1 }
 0x62e   :  { %v1566_v50 = vrot.slane %v1559_v48, 6  ;;  %v2905_v52 = vpop.f32.mrb[53].mxu0  ;;  %v2913_v53 = vpop.f32.mrb[53].mxu1  ;;  %v1521_v58 = vrot.slane %v1514_v47, 6 }
 0x62f   :  { %v1517_v54 = vpop.f32.mrb[54].mxu0  ;;  %v1562_v55 = vpop.f32.mrb[54].mxu1 }
 0x630   :  { %v1568_v59 = vadd.f32 %v1566_v50, %v3478_v18  ;;  %v2906_v60 = vpop.f32.mrb[55].mxu0  ;;  %v2914_v61 = vpop.f32.mrb[55].mxu1  ;;  %v1523_v63 = vadd.f32 %v1521_v58, %v3476_v15 }
 0x632   :  { %v2543_v62 = vmul.f32 -1.442695, %v1568_v59 }
 0x634   :  { %3115 = vpow2.f32 %v2543_v62 }
 0x635   :  { %3117 = vtanh.f32 %v1523_v63 }
 0x636   :  { %v3112_v2 = vpop.eup %3111 }
 0x637   :  { %v3114_v4 = vpop.eup %3113  ;;  %v1427_v5 = vadd.f32 1.0, %v3112_v2 }
 0x638   :  { %v1477_v20 = vadd.f32 1.0, %v3114_v4 }
 0x639   :  { %3119 = vrcp.f32 %v1427_v5 }
 0x63a   :  { %3121 = vrcp.f32 %v1477_v20 }
 0x63e   :  { %v3116_v7 = vpop.eup %3115 }
 0x63f   :  { %v3118_v21 = vpop.eup %3117  ;;  %v1572_v14 = vadd.f32 1.0, %v3116_v7 }
 0x641   :  { %3123 = vrcp.f32 %v1572_v14  ;;  %v1809_v14 = vpop.permute.xlu0 %1808 }
 0x642   :  { %vm1810_vm5 = vcmp.eq.s32.totalorder %v1809_v14, 1 }
 0x643   :  { %v3120_v8 = vpop.eup %3119 }
 0x644   :  { %v3122_v11 = vpop.eup %3121  ;;  %v1579_v12 = vmul.f32 %v3120_v8, %v3118_v21 }
 0x645   :  { %v1578_v16 = vmul.f32 %v3122_v11, %v1576_v10 }
 0x647   :  { %v1580_v19 = vadd.f32 %v1579_v12, %v1578_v16 }
 0x649   :  { %3125 = vtanh.f32 %v1580_v19  ;;  %v1590_v23 = vrot.slane %v1580_v19, 2 }
 0x64b   :  { %v3718_v36 = vsel %vm1588_vm4, %v1590_v23, %v3675_v24  ;;  %v3124_v9 = vpop.eup %3123 }
 0x64c   :  { %v1798_v21 = vrot.slane %v3718_v36, 4 }
 0x653   :  { %v3126_v29 = vpop.eup %3125 }
 0x654   :  { %v1582_v46 = vmul.f32 %v3126_v29, %v3124_v9 }
 0x656   :  { %v1594_v34 = vrot.slane %v1582_v46, 2 }
 0x658   :  { %v3721_v31 = vsel %vm1588_vm4, %v1594_v34, %v3680_v32  ;;  %v1597_v38 = vsel %vm1588_vm4, %v1594_v34, 0.0 }
 0x659   :  { %v1598_v39 = vpack.c.bf16 %v3721_v31, %v3721_v31  ;;  %v2047_v17 = vrot.slane %v1597_v38, 6 }
 0x65b   :  { %2920 = vmatmul.mubr.msk.bf16.vlgmr.msra.gmra.mrb[56].mxu0 %vm70_vm1, %v1598_v39  ;;  %2928 = vmatmul.mubr.msk.bf16.vlgmr.msra.gmra.mrb[56].mxu1 %vm70_vm1, %v1598_v39  ;;  %v3729_v24 = vsel %vm2055_vm13, %v3677_v30, %v2047_v17 }
 0x65c   :  { %2932 = vmatpush3.bf16.msra.mxu0 %v3408_v49  ;;  %2940 = vmatpush3.bf16.msra.mxu1 %v3413_v51 }
 0x65d   :  { %2933 = vmatprep.subr.bf16.mxu0 %v3190_v0  ;;  %2941 = vmatprep.subr.bf16.mxu1 %v3190_v0 }
 0x65e   :  { %2935 = vmatprep.mubr.msk.bf16.mxu0 %vm3191_vm0, %v3190_v0  ;;  %2943 = vmatprep.mubr.msk.bf16.mxu1 %vm3191_vm0, %v3190_v0 }
 0x660   :  { %2934 = vmatpush3.bf16.msra.mxu0 %v3431_v56  ;;  %2942 = vmatpush3.bf16.msra.mxu1 %v3435_v57 }
 0x661   :  { %2947 = vmatprep.subr.bf16.mxu0 %v3190_v0  ;;  %2955 = vmatprep.subr.bf16.mxu1 %v3190_v0 }
 0x663   :  { %2936 = vmatmul.mubr.msk.bf16.vlgmr.msra.gmra.mrb[60].mxu0 %vm70_vm1, %v1598_v39  ;;  %2944 = vmatmul.mubr.msk.bf16.vlgmr.msra.gmra.mrb[60].mxu1 %vm70_vm1, %v1598_v39 }
 0x664   :  { %2948 = vmatpush3.bf16.msra.mxu0 %v3359_v35  ;;  %2956 = vmatpush3.bf16.msra.mxu1 %v3363_v37 }
 0x665   :  { %2949 = vmatprep.subr.bf16.mxu0 %v3190_v0  ;;  %2957 = vmatprep.subr.bf16.mxu1 %v3190_v0 }
 0x666   :  { %2951 = vmatprep.mubr.msk.bf16.mxu0 %vm3191_vm0, %v3190_v0  ;;  %2959 = vmatprep.mubr.msk.bf16.mxu1 %vm3191_vm0, %v3190_v0 }
 0x668   :  { %2950 = vmatpush3.bf16.msra.mxu0 %v3382_v42  ;;  %2958 = vmatpush3.bf16.msra.mxu1 %v3387_v44 }
 0x669   :  { %2963 = vmatprep.subr.bf16.mxu0 %v3190_v0  ;;  %2971 = vmatprep.subr.bf16.mxu1 %v3190_v0 }
 0x72e   :  { %v1636_v35 = vpop.f32.mrb[56].mxu0  ;;  %v1686_v37 = vpop.f32.mrb[56].mxu1 }
 0x72f   :  { %v1643_v30 = vrot.slane %v1636_v35, 4  ;;  %v1693_v32 = vrot.slane %v1686_v37, 4  ;;  %v2921_v13 = vpop.f32.mrb[57].mxu0  ;;  %v2929_v25 = vpop.f32.mrb[57].mxu1 }
 0x730   :  { %v1639_v26 = vpop.f32.mrb[58].mxu0  ;;  %v1689_v33 = vpop.f32.mrb[58].mxu1 }
 0x731   :  { %v1645_v28 = vadd.f32 %v1643_v30, %v3466_v3  ;;  %v1695_v1 = vadd.f32 %v1693_v32, %v3468_v6  ;;  %v2922_v40 = vpop.f32.mrb[59].mxu0  ;;  %v2930_v42 = vpop.f32.mrb[59].mxu1 }
 0x733   :  { %v2545_v41 = vmul.f32 -1.442695, %v1645_v28  ;;  %v2547_v44 = vmul.f32 -1.442695, %v1695_v1 }
 0x735   :  { %3127 = vpow2.f32 %v2545_v41 }
 0x736   :  { %3129 = vpow2.f32 %v2547_v44  ;;  %v1736_v43 = vpop.f32.mrb[60].mxu0  ;;  %v1781_v45 = vpop.f32.mrb[60].mxu1 }
 0x737   :  { %v1788_v47 = vrot.slane %v1781_v45, 4  ;;  %v2937_v48 = vpop.f32.mrb[61].mxu0  ;;  %v2945_v50 = vpop.f32.mrb[61].mxu1  ;;  %v1743_v54 = vrot.slane %v1736_v43, 4 }
 0x738   :  { %v1739_v52 = vpop.f32.mrb[62].mxu0  ;;  %v1784_v53 = vpop.f32.mrb[62].mxu1 }
 0x739   :  { %v1790_v55 = vadd.f32 %v1788_v47, %v3478_v18  ;;  %v2938_v58 = vpop.f32.mrb[63].mxu0  ;;  %v2946_v59 = vpop.f32.mrb[63].mxu1  ;;  %v1745_v61 = vadd.f32 %v1743_v54, %v3476_v15 }
 0x73b   :  { %v2550_v60 = vmul.f32 -1.442695, %v1790_v55 }
 0x73d   :  { %3131 = vpow2.f32 %v2550_v60 }
 0x73e   :  { %3133 = vtanh.f32 %v1745_v61 }
 0x73f   :  { %v3128_v62 = vpop.eup %3127 }
 0x740   :  { %v3130_v63 = vpop.eup %3129  ;;  %v1649_v2 = vadd.f32 1.0, %v3128_v62 }
 0x741   :  { %v1699_v4 = vadd.f32 1.0, %v3130_v63 }
 0x742   :  { %3135 = vrcp.f32 %v1649_v2 }
 0x743   :  { %3137 = vrcp.f32 %v1699_v4 }
 0x747   :  { %v3132_v5 = vpop.eup %3131 }
 0x748   :  { %v3134_v20 = vpop.eup %3133  ;;  %v1794_v11 = vadd.f32 1.0, %v3132_v5 }
 0x74a   :  { %3139 = vrcp.f32 %v1794_v11 }
 0x74c   :  { %v3136_v7 = vpop.eup %3135 }
 0x74d   :  { %v3138_v8 = vpop.eup %3137  ;;  %v1801_v10 = vmul.f32 %v3136_v7, %v3134_v20 }
 0x74e   :  { %v1800_v12 = vmul.f32 %v3138_v8, %v1798_v21 }
 0x750   :  { %v1802_v16 = vadd.f32 %v1801_v10, %v1800_v12  ;;  %v2031_v12 = vpop.permute.xlu1 %2030 }
 0x751   :  { %vm2032_vm6 = vcmp.eq.s32.totalorder %v2031_v12, 1 }
 0x752   :  { %3141 = vtanh.f32 %v1802_v16  ;;  %v1812_v19 = vrot.slane %v1802_v16, 4 }
 0x754   :  { %v3763_v22 = vsel %vm1810_vm5, %v1812_v19, %v3718_v36  ;;  %v3140_v23 = vpop.eup %3139  ;;  %v2067_v36 = vld [vmem:[%s3871_s5 + $0x18] sm:$0xff] }
 0x755   :  { %v2020_v20 = vrot.slane %v3763_v22, 2 }
 0x75c   :  { %v3142_v9 = vpop.eup %3141 }
 0x75d   :  { %v1804_v29 = vmul.f32 %v3142_v9, %v3140_v23 }
 0x75f   :  { %v1816_v46 = vrot.slane %v1804_v29, 4  ;;  %v2132_v29 = vld [vmem:[#allocation2] sm:$0xff] }
 0x761   :  { %v1818_v34 = vsel %vm1810_vm5, %v1816_v46, %v3721_v31  ;;  %v1819_v38 = vsel %vm1810_vm5, %v1816_v46, 0.0  ;;  %v2133_v46 = vld [vmem:[#allocation2 + $0x8] sm:$0xff] }
 0x762   :  { %v1820_v39 = vpack.c.bf16 %v1818_v34, %v1818_v34  ;;  %v2050_v17 = vrot.slane %v1819_v38, 4  ;;  %v2135_v34 = vpack.c.bf16 %v2133_v46, %v2132_v29  ;;  %v2137_v38 = vld [vmem:[#allocation2 + $0x10] sm:$0xff]  ;;  %v2565_v46 = vld [vmem:[%s3874_s8] ss:$0 sm:$0xff] }
 0x764   :  { %2952 = vmatmul.mubr.msk.bf16.vlgmr.msra.gmra.mrb[64].mxu0 %vm70_vm1, %v1820_v39  ;;  %2960 = vmatmul.mubr.msk.bf16.vlgmr.msra.gmra.mrb[64].mxu1 %vm70_vm1, %v1820_v39  ;;  %v3770_v35 = vsel %vm2057_vm14, %v3729_v24, %v2050_v17 }
 0x765   :  { %2964 = vmatpush3.bf16.msra.mxu0 %v3408_v49  ;;  %2972 = vmatpush3.bf16.msra.mxu1 %v3413_v51  ;;  %v2064_v49 = vld [vmem:[%s3871_s5] sm:$0xff]  ;;  %v2065_v51 = vld [vmem:[%s3871_s5 + $0x8] sm:$0xff] }
 0x766   :  { %2965 = vmatprep.subr.bf16.mxu0 %v3190_v0  ;;  %2973 = vmatprep.subr.bf16.mxu1 %v3190_v0 }
 0x767   :  { %2967 = vmatprep.mubr.msk.bf16.mxu0 %vm3191_vm0, %v3190_v0  ;;  %2975 = vmatprep.mubr.msk.bf16.mxu1 %vm3191_vm0, %v3190_v0 }
 0x769   :  { %2966 = vmatpush3.bf16.msra.mxu0 %v3431_v56  ;;  %2974 = vmatpush3.bf16.msra.mxu1 %v3435_v57  ;;  %v2069_v56 = vpack.c.bf16 %v2065_v51, %v2064_v49  ;;  %v2066_v57 = vld [vmem:[%s3871_s5 + $0x10] sm:$0xff] }
 0x76a   :  { %2979 = vmatprep.subr.bf16.mxu0 %v3190_v0  ;;  %2987 = vmatprep.subr.bf16.mxu1 %v3190_v0  ;;  %v2070_v31 = vpack.c.bf16 %v2067_v36, %v2066_v57 }
 0x76c   :  { %2968 = vmatmul.mubr.msk.bf16.vlgmr.msra.gmra.mrb[68].mxu0 %vm70_vm1, %v1820_v39  ;;  %2976 = vmatmul.mubr.msk.bf16.vlgmr.msra.gmra.mrb[68].mxu1 %vm70_vm1, %v1820_v39  ;;  %v2138_v39 = vld [vmem:[#allocation2 + $0x18] sm:$0xff] }
 0x76d   :  { %2983 = vmatprep.mubr.msk.bf16.mxu0 %vm3191_vm0, %v3190_v0  ;;  %2989 = vmatprep.mubr.msk.bf16.mxu1 %vm3191_vm0, %v3190_v0  ;;  %v2140_v17 = vpack.c.bf16 %v2138_v39, %v2137_v38 }
 0x76e   :  { %2980 = vmatpush3.bf16.msra.mxu0 %v2069_v56 }
 0x76f   :  { %2981 = vmatprep.subr.bf16.mxu0 %v3190_v0  ;;  %2988 = vmatpush3.bf16.msra.mxu1 %v2140_v17 }
 0x770   :  { %2999 = vmatprep.subr.bf16.mxu1 %v3190_v0 }
 0x772   :  { %2982 = vmatpush3.bf16.msra.mxu0 %v2070_v31 }
 0x773   :  { %2993 = vmatprep.subr.bf16.mxu0 %v3190_v0 }
 0x837   :  { %v1858_v24 = vpop.f32.mrb[64].mxu0  ;;  %v1908_v37 = vpop.f32.mrb[64].mxu1 }
 0x838   :  { %v1865_v30 = vrot.slane %v1858_v24, 2  ;;  %v1915_v32 = vrot.slane %v1908_v37, 2  ;;  %v2953_v13 = vpop.f32.mrb[65].mxu0  ;;  %v2961_v25 = vpop.f32.mrb[65].mxu1  ;;  %v2291_v24 = vld [vmem:[#allocation2 + $0x30] sm:$0xff]  ;;  %v2292_v37 = vld [vmem:[#allocation2 + $0x38] sm:$0xff] }
 0x839   :  { %v1861_v26 = vpop.f32.mrb[66].mxu0  ;;  %v1911_v33 = vpop.f32.mrb[66].mxu1 }
 0x83a   :  { %v1867_v28 = vadd.f32 %v1865_v30, %v3466_v3  ;;  %v1917_v1 = vadd.f32 %v1915_v32, %v3468_v6  ;;  %v2954_v40 = vpop.f32.mrb[67].mxu0  ;;  %v2962_v42 = vpop.f32.mrb[67].mxu1  ;;  %v2237_v26 = vld [vmem:[#allocation2 + $0x20] sm:$0xff]  ;;  %v2238_v33 = vld [vmem:[#allocation2 + $0x28] sm:$0xff] }
 0x83c   :  { %v2552_v41 = vmul.f32 -1.442695, %v1867_v28  ;;  %v2554_v44 = vmul.f32 -1.442695, %v1917_v1  ;;  %v2293_v28 = vpack.c.bf16 %v2292_v37, %v2291_v24 }
 0x83e   :  { %3143 = vpow2.f32 %v2552_v41 }
 0x83f   :  { %3145 = vpow2.f32 %v2554_v44  ;;  %v1958_v43 = vpop.f32.mrb[68].mxu0  ;;  %v2003_v45 = vpop.f32.mrb[68].mxu1  ;;  %v2239_v44 = vpack.c.bf16 %v2238_v33, %v2237_v26 }
 0x840   :  { %v2010_v47 = vrot.slane %v2003_v45, 2  ;;  %v2969_v48 = vpop.f32.mrb[69].mxu0  ;;  %v2977_v50 = vpop.f32.mrb[69].mxu1  ;;  %v1965_v54 = vrot.slane %v1958_v43, 2 }
 0x841   :  { %v1961_v52 = vpop.f32.mrb[70].mxu0  ;;  %v2006_v53 = vpop.f32.mrb[70].mxu1  ;;  %v2345_v48 = vld [vmem:[#allocation2 + $0x40] sm:$0xff]  ;;  %v2346_v50 = vld [vmem:[#allocation2 + $0x48] sm:$0xff] }
 0x842   :  { %v2012_v55 = vadd.f32 %v2010_v47, %v3478_v18  ;;  %v2970_v58 = vpop.f32.mrb[71].mxu0  ;;  %v2978_v3 = vpop.f32.mrb[71].mxu1  ;;  %v1967_v6 = vadd.f32 %v1965_v54, %v3476_v15 }
 0x844   :  { %v2557_v59 = vmul.f32 -1.442695, %v2012_v55  ;;  %v2348_v55 = vpack.c.bf16 %v2346_v50, %v2345_v48 }
 0x846   :  { %3147 = vpow2.f32 %v2557_v59  ;;  %v2408_v59 = vld [vmem:[%s3875_s9] sm:$0xff] }
 0x847   :  { %3149 = vtanh.f32 %v1967_v6  ;;  %v2409_v6 = vld [vmem:[%s3875_s9 + $0x8] sm:$0xff] }
 0x848   :  { %v3144_v60 = vpop.eup %3143 }
 0x849   :  { %v3146_v61 = vpop.eup %3145  ;;  %v1871_v62 = vadd.f32 1.0, %v3144_v60  ;;  %v2411_v60 = vpack.c.bf16 %v2409_v6, %v2408_v59 }
 0x84a   :  { %v1921_v63 = vadd.f32 1.0, %v3146_v61 }
 0x84b   :  { %3151 = vrcp.f32 %v1871_v62 }
 0x84c   :  { %3153 = vrcp.f32 %v1921_v63 }
 0x850   :  { %v3148_v2 = vpop.eup %3147 }
 0x851   :  { %v3150_v4 = vpop.eup %3149  ;;  %v2016_v21 = vadd.f32 1.0, %v3148_v2 }
 0x853   :  { %3155 = vrcp.f32 %v2016_v21 }
 0x855   :  { %v3152_v5 = vpop.eup %3151 }
 0x856   :  { %v3154_v7 = vpop.eup %3153  ;;  %v2023_v18 = vmul.f32 %v3152_v5, %v3150_v4 }
 0x857   :  { %v2022_v8 = vmul.f32 %v3154_v7, %v2020_v20 }
 0x859   :  { %v2024_v10 = vadd.f32 %v2023_v18, %v2022_v8 }
 0x85b   :  { %3157 = vtanh.f32 %v2024_v10 }
 0x85d   :  { %v3156_v15 = vpop.eup %3155 }
 0x865   :  { %v3158_v11 = vpop.eup %3157 }
 0x866   :  { %v2026_v14 = vmul.f32 %v3158_v11, %v3156_v15 }
 0x868   :  { %v2034_v16 = vrot.slane %v2026_v14, 6 }
 0x86a   :  { %v2036_v19 = vsel %vm2032_vm6, %v2034_v16, 0.0 }
 0x86b   :  { %v2053_v23 = vrot.slane %v2036_v19, 2 }
 0x86d   :  { %v2063_v9 = vsel %vm2059_vm2, %v3770_v35, %v2053_v23 }
 0x86e   :  { %v2068_v22 = vpack.c.bf16 %v2063_v9, %v3641_v27  ;;  %v2558_v27 = vld [vmem:[%s3872_s6] ss:$0 sm:$0xff] }
 0x870   :  { %2984 = vmatmul.mubr.msk.bf16.vlgmr.msra.gmra.mrb[72].mxu0 %vm70_vm1, %v2068_v22  ;;  %vm2147_vm1 = vcmask 130048  }
 0x871   :  { %2995 = vmatprep.mubr.msk.bf16.mxu0 %vm3191_vm0, %v3190_v0  ;;  %2994 = vmatpush3.bf16.msra.mxu0 %v2135_v34 }
 0x872   :  { %3005 = vmatprep.subr.bf16.mxu0 %v3190_v0 }
 0x943   :  { %v2115_v35 = vpop.f32.mrb[72].mxu0 }
 0x944   :  { %v3820_v49 = vadd.f32 %v2558_v27, %v2115_v35  ;;  %v2985_v51 = vpop.f32.mrb[73].mxu0 }
 0x945   :  { %v2118_v56 = vpop.f32.mrb[74].mxu0 }
 0x946   :  { %v2124_v57 = vrot.slane %v3820_v49, 4  ;;  %v3823_v36 = vadd.f32 %v2558_v27, %v2118_v56  ;;  %v2986_v31 = vpop.f32.mrb[75].mxu0 }
 0x948   :  { %v2125_v30 = vrot.slane %v3823_v36, 4  ;;  %v2130_v32 = vsel %vm2057_vm14, 0.0, %v2124_v57 }
 0x94a   :  { %v2126_v13 = vsel %vm2057_vm14, %v2124_v57, %v2125_v30  ;;  %v2131_v25 = vsel %vm2057_vm14, %v2125_v30, 0.0  ;;  %v2566_v30 = vld [vmem:[%s3876_s10] ss:$0 sm:$0xff] }
 0x94b   :  { %v2134_v1 = vpack.c.bf16 %v2126_v13, %v2130_v32  ;;  %v2139_v40 = vpack.c.bf16 %v2131_v25, %v2131_v25  ;;  %v2347_v3 = vpack.c.bf16 %v2131_v25, %v2126_v13 }
 0x94d   :  { %v2145_v42 = vrot.slane %v2139_v40, 1  ;;  %2996 = vmatmul.mubr.msk.bf16.vlgmr.msra.gmra.mrb[76].mxu0 %vm2147_vm1, %v2134_v1  ;;  %v2144_v41 = vrot.slane %v2134_v1, 1  ;;  %v2296_v45 = vrot.slane %v2139_v40, 3  ;;  %v2295_v47 = vrot.slane %v2134_v1, 3 }
 0x94e   :  { %3006 = vmatpush3.bf16.msra.mxu0 %v2293_v28  ;;  %3007 = vmatprep.mubr.msk.bf16.mxu0 %vm3191_vm0, %v3190_v0  ;;  %v2242_v52 = vrot.slane %v2139_v40, 2  ;;  %v2241_v53 = vrot.slane %v2134_v1, 2 }
 0x94f   :  { %v2146_v43 = vsel %vm2143_vm7, %v2144_v41, %v2145_v42  ;;  %3017 = vmatprep.subr.bf16.mxu0 %v3190_v0  ;;  %v2297_v54 = vsel %vm2294_vm8, %v2295_v47, %v2296_v45 }
 0x950   :  { %2990 = vmatmul.mubr.msk.bf16.vlgmr.msra.gmra.mrb[72].mxu1 %vm2147_vm1, %v2146_v43  ;;  %v2243_v58 = vsel %vm2059_vm2, %v2241_v53, %v2242_v52 }
 0x951   :  { %3000 = vmatpush3.bf16.msra.mxu1 %v2239_v44  ;;  %3001 = vmatprep.mubr.msk.bf16.mxu1 %vm3191_vm0, %v3190_v0 }
 0x952   :  { %3011 = vmatprep.subr.bf16.mxu1 %v3190_v0 }
 0x955   :  { %3008 = vmatmul.mubr.msk.bf16.vlgmr.msra.gmra.mrb[80].mxu0 %vm2147_vm1, %v2297_v54 }
 0x956   :  { %3019 = vmatprep.mubr.msk.bf16.mxu0 %vm3191_vm0, %v3190_v0  ;;  %3018 = vmatpush3.bf16.msra.mxu0 %v2411_v60 }
 0x958   :  { %3002 = vmatmul.mubr.msk.bf16.vlgmr.msra.gmra.mrb[76].mxu1 %vm2147_vm1, %v2243_v58 }
 0x959   :  { %3012 = vmatpush3.bf16.msra.mxu1 %v2348_v55  ;;  %3013 = vmatprep.mubr.msk.bf16.mxu1 %vm3191_vm0, %v3190_v0  ;;  %vm2463_vm0 = vcmask 64512  }
 0x960   :  { %3014 = vmatmul.mubr.msk.bf16.vlgmr.msra.gmra.mrb[80].mxu1 %vm2147_vm1, %v2347_v3 }
 0xa20   :  { %v2229_v61 = vpop.f32.mrb[76].mxu0 }
 0xa21   :  { %v2997_v62 = vpop.f32.mrb[77].mxu0 }
 0xa22   :  { %v2232_v63 = vpop.f32.mrb[78].mxu0 }
 0xa23   :  { %v2185_v2 = vpop.f32.mrb[72].mxu1  ;;  %v2998_v4 = vpop.f32.mrb[79].mxu0 }
 0xa24   :  { %v2230_v5 = vadd.f32 %v2229_v61, %v2185_v2  ;;  %v2991_v0 = vpop.f32.mrb[73].mxu1 }
 0xa25   :  { %v2188_v20 = vpop.f32.mrb[74].mxu1 }
 0xa26   :  { %v2233_v7 = vadd.f32 %v2232_v63, %v2188_v20  ;;  %v2992_v18 = vpop.f32.mrb[75].mxu1 }
 0xa28   :  { %v2335_v21 = vpop.f32.mrb[80].mxu0 }
 0xa29   :  { %v3009_v8 = vpop.f32.mrb[81].mxu0 }
 0xa2a   :  { %v2338_v10 = vpop.f32.mrb[82].mxu0 }
 0xa2b   :  { %v2281_v15 = vpop.f32.mrb[76].mxu1  ;;  %v3010_v11 = vpop.f32.mrb[83].mxu0 }
 0xa2c   :  { %v2288_v12 = vadd.f32 %v2281_v15, %v2230_v5  ;;  %v3003_v14 = vpop.f32.mrb[77].mxu1 }
 0xa2d   :  { %v2284_v16 = vpop.f32.mrb[78].mxu1 }
 0xa2e   :  { %v2289_v19 = vadd.f32 %v2284_v16, %v2233_v7  ;;  %v3004_v23 = vpop.f32.mrb[79].mxu1  ;;  %v2342_v9 = vadd.f32 %v2335_v21, %v2288_v12 }
 0xa30   :  { %v2343_v22 = vadd.f32 %v2338_v10, %v2289_v19 }
 0xa33   :  { %v2386_v29 = vpop.f32.mrb[80].mxu1 }
 0xa34   :  { %v2393_v34 = vadd.f32 %v2386_v29, %v2342_v9  ;;  %v3015_v38 = vpop.f32.mrb[81].mxu1 }
 0xa35   :  { %v2389_v39 = vpop.f32.mrb[82].mxu1 }
 0xa36   :  { %v2402_v17 = vadd.f32 %v2565_v46, %v2393_v34  ;;  %v2394_v27 = vadd.f32 %v2389_v39, %v2343_v22  ;;  %v3016_v35 = vpop.f32.mrb[83].mxu1 }
 0xa38   :  { %3159 = vtanh.f32 %v2402_v17  ;;  %v2403_v51 = vadd.f32 %v2565_v46, %v2394_v27 }
 0xa3a   :  { %3161 = vtanh.f32 %v2403_v51 }
 0xa42   :  { %v3160_v56 = vpop.eup %3159 }
 0xa43   :  { %v2406_v31 = vadd.f32 %v3160_v56, %v3820_v49 }
 0xa44   :  { %v3162_v57 = vpop.eup %3161 }
 0xa45   :  { %v2407_v24 = vadd.f32 %v3162_v57, %v3823_v36 }
 0xa47   :  { %v2410_v37 = vpack.c.bf16 %v2407_v24, %v2406_v31 }
 0xa49   :  { %3020 = vmatmul.mubr.msk.bf16.vlgmr.msra.gmra.mrb[84].mxu0 %vm2147_vm1, %v2410_v37 }
 0xb1c   :  { %v2456_v32 = vpop.f32.mrb[84].mxu0 }
 0xb1d   :  { %v2457_v13 = vadd.f32 %v2566_v30, %v2456_v32  ;;  %v3021_v25 = vpop.f32.mrb[85].mxu0 }
 0xb1e   :  { %v2459_v26 = vpop.f32.mrb[86].mxu0 }
 0xb1f   :  { %2464 = vst.msk [vmem:[%s3877_s11] sm:$0xff] %vm2463_vm0, %v2457_v13  ;;  %v2460_v33 = vadd.f32 %v2566_v30, %v2459_v26  ;;  %v3022_v49 = vpop.f32.mrb[87].mxu0 }
 0xb21   :  { %2465 = vst.msk [vmem:[%s3877_s11 + $0x8] sm:$0xff] %vm2463_vm0, %v2460_v33 }
 0xb22   :  { %2470 = vsyncpa [#allocation3], 1 }

</bundles_post_ra>
